<compile_context>
chip_gen: v7x
topology: tpu7x:2x2x1
jax: 0.10.0
libtpu: 0.0.40
codegen_flags: <defaults>
</compile_context>

<pallas_src>
import functools

import jax
import jax.numpy as jnp
import numpy as np
from jax.experimental import pallas as pl
from jax.experimental.pallas import tpu as pltpu

EPS = 1e-5


def _pass1_conv_stats_kernel(xpad_ref, w_ref, b_ref, y_ref, sum_ref, sq_ref, *, H, W):
    """Conv2d(3x3, pad=1) + bias for one image; accumulate BN sum / sum-of-squares."""
    Cp = y_ref.shape[-1]

    # conv as 9 shifted matmuls on the VMEM-resident padded tile (no im2col in HBM)
    acc = jnp.zeros((H * W, Cp), jnp.float32)
    for t in range(9):
        dy, dx = divmod(t, 3)
        lhs = xpad_ref[pl.ds(dy, H), pl.ds(dx, W), :].reshape(H * W, Cp)
        acc = acc + jnp.dot(lhs, w_ref[t], preferred_element_type=jnp.float32)
    y = acc + b_ref[...]
    y_ref[...] = y

    # global BN statistics: single-pass sum / sumsq accumulation across grid steps
    @pl.when(pl.program_id(0) == 0)
    def _init():
        sum_ref[...] = jnp.zeros_like(sum_ref)
        sq_ref[...] = jnp.zeros_like(sq_ref)

    sum_ref[...] += jnp.sum(y, axis=0, keepdims=True)
    sq_ref[...] += jnp.sum(y * y, axis=0, keepdims=True)


def _pass2_bn_relu_residual_kernel(y_ref, x_ref, sum_ref, sq_ref, g_ref, be_ref,
                                   o_ref, *, inv_m, eps):
    """BatchNorm (folded to one FMA) -> ReLU -> residual add."""
    mean = sum_ref[...] * inv_m
    var = sq_ref[...] * inv_m - mean * mean          # biased var (PyTorch training BN)
    inv_std = jax.lax.rsqrt(var + eps)               # EUP path
    scale = g_ref[...] * inv_std                     # (1, Cp)
    shift = be_ref[...] - mean * scale               # (1, Cp)
    y = y_ref[...] * scale + shift                   # single FMA per element
    o_ref[...] = (jnp.maximum(y, 0.0) + x_ref[...]).astype(o_ref.dtype)


def _pick_row_tile(m):
    for tm in (2048, 1024, 512, 256, 128, 64, 32, 16, 8):
        if m % tm == 0:
            return tm
    return m


def residual_block(x_nchw, w_oihw, b, gamma, beta):
    """x_nchw: (N, C, H, W) float32. Returns (N, C, H, W)."""
    N, C, H, W = x_nchw.shape
    Cp = ((C + 127) // 128) * 128                    # lane-dense / MXU-wide channels
    M = N * H * W
    assert (H * W) % 8 == 0 or N == 1, "per-image row block must be sublane aligned"

    # ---- glue: layout conversion + zero padding only (no im2col materialization) ----
    x_nhwc = jnp.transpose(x_nchw, (0, 2, 3, 1)).astype(jnp.float32)
    x_cp = jnp.pad(x_nhwc, ((0, 0), (0, 0), (0, 0), (0, Cp - C)))       # (N,H,W,Cp)
    xpad = jnp.pad(x_cp, ((0, 0), (1, 1), (1, 1), (0, 0)))              # (N,H+2,W+2,Cp)
    x_flat = x_cp.reshape(M, Cp)                                        # residual input

    # conv weight (Cout, Cin, 3, 3) -> (ky, kx, Cin, Cout) -> (9, Cin, Cout), padded
    w_taps = jnp.transpose(w_oihw, (2, 3, 1, 0)).reshape(9, C, C)
    w_p = jnp.pad(w_taps, ((0, 0), (0, Cp - C), (0, Cp - C)))
    b_p = jnp.pad(b, (0, Cp - C)).reshape(1, Cp)
    g_p = jnp.pad(gamma, (0, Cp - C)).reshape(1, Cp)
    be_p = jnp.pad(beta, (0, Cp - C)).reshape(1, Cp)

    # ---- pass 1: conv + bias, global BN statistics (tiled & pipelined over batch) ----
    # TODO(synk): for very large H*W, additionally tile H with a 1-row halo (manual DMA)
    # so one image block stays inside the v7x 64 MiB VMEM budget.
    y, ssum, ssq = pl.pallas_call(
        functools.partial(_pass1_conv_stats_kernel, H=H, W=W),
        out_shape=(
            jax.ShapeDtypeStruct((M, Cp), jnp.float32),
            jax.ShapeDtypeStruct((1, Cp), jnp.float32),
            jax.ShapeDtypeStruct((1, Cp), jnp.float32),
        ),
        grid=(N,),
        in_specs=[
            pl.BlockSpec((None, H + 2, W + 2, Cp), lambda n: (n, 0, 0, 0)),
            pl.BlockSpec((9, Cp, Cp), lambda n: (0, 0, 0)),
            pl.BlockSpec((1, Cp), lambda n: (0, 0)),
        ],
        out_specs=[
            pl.BlockSpec((H * W, Cp), lambda n: (n, 0)),
            pl.BlockSpec((1, Cp), lambda n: (0, 0)),
            pl.BlockSpec((1, Cp), lambda n: (0, 0)),
        ],
        compiler_params=pltpu.CompilerParams(
            dimension_semantics=("arbitrary",)),      # stats accumulate across steps
        cost_estimate=pl.CostEstimate(
            flops=int(2 * M * 9 * Cp * Cp + 4 * M * Cp),
            transcendentals=0,
            bytes_accessed=int(4 * (N * (H + 2) * (W + 2) * Cp + 9 * Cp * Cp + M * Cp))),
    )(xpad, w_p, b_p)

    # ---- pass 2: normalize (folded scale/shift), ReLU, residual add ----
    TM = _pick_row_tile(M)
    out_flat = pl.pallas_call(
        functools.partial(_pass2_bn_relu_residual_kernel, inv_m=1.0 / M, eps=EPS),
        out_shape=jax.ShapeDtypeStruct((M, Cp), x_nchw.dtype),
        grid=(M // TM,),
        in_specs=[
            pl.BlockSpec((TM, Cp), lambda i: (i, 0)),
            pl.BlockSpec((TM, Cp), lambda i: (i, 0)),
            pl.BlockSpec((1, Cp), lambda i: (0, 0)),
            pl.BlockSpec((1, Cp), lambda i: (0, 0)),
            pl.BlockSpec((1, Cp), lambda i: (0, 0)),
            pl.BlockSpec((1, Cp), lambda i: (0, 0)),
        ],
        out_specs=pl.BlockSpec((TM, Cp), lambda i: (i, 0)),
        compiler_params=pltpu.CompilerParams(
            dimension_semantics=("parallel",)),       # rows split across TCs on v7x
        cost_estimate=pl.CostEstimate(
            flops=int(6 * M * Cp),
            transcendentals=int(Cp),
            bytes_accessed=int(4 * 3 * M * Cp)),
    )(y, x_flat, ssum, ssq, g_p, be_p)

    out = out_flat[:, :C].reshape(N, H, W, C)
    return jnp.transpose(out, (0, 3, 1, 2))


def reference(x_nchw, w_oihw, b, gamma, beta):
    """Pure-JAX reference mirroring PyTorch ResidualBlock forward (training-mode BN)."""
    y = jax.lax.conv_general_dilated(
        x_nchw, w_oihw, window_strides=(1, 1), padding="SAME",
        dimension_numbers=("NCHW", "OIHW", "NCHW"))
    y = y + b[None, :, None, None]
    mean = jnp.mean(y, axis=(0, 2, 3), keepdims=True)
    var = jnp.mean((y - mean) ** 2, axis=(0, 2, 3), keepdims=True)
    y = (y - mean) / jnp.sqrt(var + EPS)
    y = y * gamma[None, :, None, None] + beta[None, :, None, None]
    y = jnp.maximum(y, 0.0)
    return y + x_nchw


if __name__ == "__main__":
    # conv2d_amount=1, use_batchnorm=True, act_fn=ReLU
    N, C, H, W = 2, 4, 16, 16

    key = jax.random.PRNGKey(0)
    k_x, k_w, k_b, k_g, k_be = jax.random.split(key, 5)

    x = jax.random.normal(k_x, (N, C, H, W), dtype=jnp.float32)
    fan_in = C * 3 * 3
    bound = 1.0 / np.sqrt(fan_in)
    w = jax.random.uniform(k_w, (C, C, 3, 3), jnp.float32, -bound, bound)
    b = jax.random.uniform(k_b, (C,), jnp.float32, -bound, bound)
    gamma = 1.0 + 0.1 * jax.random.normal(k_g, (C,), dtype=jnp.float32)
    beta = 0.1 * jax.random.normal(k_be, (C,), dtype=jnp.float32)

    out = jax.block_until_ready(jax.jit(residual_block)(x, w, b, gamma, beta))
    ref = jax.block_until_ready(reference(x, w, b, gamma, beta))
    np.testing.assert_allclose(np.asarray(out), np.asarray(ref), rtol=1e-4, atol=1e-4)

    print("KERNEL_OK")
</pallas_src>

<mosaic_0001>
module attributes {stable_mosaic.version = 11 : i64} {
  func.func @_pass2_bn_relu_residual_kernel(%arg0: i32, %arg1: memref<512x128xf32, #tpu.memory_space<vmem>>, %arg2: memref<512x128xf32, #tpu.memory_space<vmem>>, %arg3: memref<1x128xf32, #tpu.memory_space<vmem>>, %arg4: memref<1x128xf32, #tpu.memory_space<vmem>>, %arg5: memref<1x128xf32, #tpu.memory_space<vmem>>, %arg6: memref<1x128xf32, #tpu.memory_space<vmem>>, %arg7: memref<512x128xf32, #tpu.memory_space<vmem>>) attributes {dimension_semantics = [#tpu.dimension_semantics<parallel>], iteration_bounds = array<i64: 1>, scalar_prefetch = 0 : i64, scratch_operands = 0 : i64, tpu.core_type = #tpu.core_type<tc>, window_params = [{transform_indices = @transform_0, window_bounds = array<i64: 512, 128>}, {transform_indices = @transform_1, window_bounds = array<i64: 512, 128>}, {pipeline_mode = #tpu.pipeline_mode<synchronous>, transform_indices = @transform_2, window_bounds = array<i64: 1, 128>}, {pipeline_mode = #tpu.pipeline_mode<synchronous>, transform_indices = @transform_3, window_bounds = array<i64: 1, 128>}, {pipeline_mode = #tpu.pipeline_mode<synchronous>, transform_indices = @transform_4, window_bounds = array<i64: 1, 128>}, {pipeline_mode = #tpu.pipeline_mode<synchronous>, transform_indices = @transform_5, window_bounds = array<i64: 1, 128>}, {transform_indices = @transform_6, window_bounds = array<i64: 512, 128>}]} {
    %c0 = arith.constant 0 : index
    %c0_0 = arith.constant 0 : index
    %0 = vector.load %arg3[%c0, %c0_0] : memref<1x128xf32, #tpu.memory_space<vmem>>, vector<1x128xf32>
    %cst = arith.constant 0.001953125 : f32
    %1 = vector.broadcast %cst : f32 to vector<1x128xf32>
    %2 = arith.mulf %0, %1 : vector<1x128xf32>
    %c0_1 = arith.constant 0 : index
    %c0_2 = arith.constant 0 : index
    %3 = vector.load %arg4[%c0_1, %c0_2] : memref<1x128xf32, #tpu.memory_space<vmem>>, vector<1x128xf32>
    %cst_3 = arith.constant 0.001953125 : f32
    %4 = vector.broadcast %cst_3 : f32 to vector<1x128xf32>
    %5 = arith.mulf %3, %4 : vector<1x128xf32>
    %6 = arith.mulf %2, %2 : vector<1x128xf32>
    %7 = arith.subf %5, %6 : vector<1x128xf32>
    %cst_4 = arith.constant 9.99999974E-6 : f32
    %8 = vector.broadcast %cst_4 : f32 to vector<1x128xf32>
    %9 = arith.addf %7, %8 : vector<1x128xf32>
    %10 = math.rsqrt %9 : vector<1x128xf32>
    %c0_5 = arith.constant 0 : index
    %c0_6 = arith.constant 0 : index
    %11 = vector.load %arg5[%c0_5, %c0_6] : memref<1x128xf32, #tpu.memory_space<vmem>>, vector<1x128xf32>
    %12 = arith.mulf %11, %10 : vector<1x128xf32>
    %c0_7 = arith.constant 0 : index
    %c0_8 = arith.constant 0 : index
    %13 = vector.load %arg6[%c0_7, %c0_8] : memref<1x128xf32, #tpu.memory_space<vmem>>, vector<1x128xf32>
    %14 = arith.mulf %2, %12 : vector<1x128xf32>
    %15 = arith.subf %13, %14 : vector<1x128xf32>
    %c0_9 = arith.constant 0 : index
    %c0_10 = arith.constant 0 : index
    %16 = vector.load %arg1[%c0_9, %c0_10] : memref<512x128xf32, #tpu.memory_space<vmem>>, vector<512x128xf32>
    %17 = vector.broadcast %12 : vector<1x128xf32> to vector<512x128xf32>
    %18 = arith.mulf %16, %17 : vector<512x128xf32>
    %19 = vector.broadcast %15 : vector<1x128xf32> to vector<512x128xf32>
    %20 = arith.addf %18, %19 : vector<512x128xf32>
    %cst_11 = arith.constant 0.000000e+00 : f32
    %21 = vector.broadcast %cst_11 : f32 to vector<512x128xf32>
    %22 = arith.maximumf %20, %21 : vector<512x128xf32>
    %c0_12 = arith.constant 0 : index
    %c0_13 = arith.constant 0 : index
    %23 = vector.load %arg2[%c0_12, %c0_13] : memref<512x128xf32, #tpu.memory_space<vmem>>, vector<512x128xf32>
    %24 = arith.addf %22, %23 : vector<512x128xf32>
    %c0_14 = arith.constant 0 : index
    %c0_15 = arith.constant 0 : index
    %25 = vector.load %arg7[%c0_14, %c0_15] : memref<512x128xf32, #tpu.memory_space<vmem>>, vector<512x128xf32>
    tpu.vector_store %arg7[%c0_14, %c0_15], %24 {strides = array<i32>} : memref<512x128xf32, #tpu.memory_space<vmem>>, vector<512x128xf32>,
    return
  }
  func.func @transform_0(%arg0: i32) -> (i32, i32) {
    %c0_i32 = arith.constant 0 : i32
    %c0_i32_0 = arith.constant 0 : i32
    return %arg0, %c0_i32 : i32, i32
  }
  func.func @transform_1(%arg0: i32) -> (i32, i32) {
    %c0_i32 = arith.constant 0 : i32
    %c0_i32_0 = arith.constant 0 : i32
    return %arg0, %c0_i32 : i32, i32
  }
  func.func @transform_2(%arg0: i32) -> (i32, i32) {
    %c0_i32 = arith.constant 0 : i32
    %c0_i32_0 = arith.constant 0 : i32
    %c0_i32_1 = arith.constant 0 : i32
    return %c0_i32, %c0_i32_0 : i32, i32
  }
  func.func @transform_3(%arg0: i32) -> (i32, i32) {
    %c0_i32 = arith.constant 0 : i32
    %c0_i32_0 = arith.constant 0 : i32
    %c0_i32_1 = arith.constant 0 : i32
    return %c0_i32, %c0_i32_0 : i32, i32
  }
  func.func @transform_4(%arg0: i32) -> (i32, i32) {
    %c0_i32 = arith.constant 0 : i32
    %c0_i32_0 = arith.constant 0 : i32
    %c0_i32_1 = arith.constant 0 : i32
    return %c0_i32, %c0_i32_0 : i32, i32
  }
  func.func @transform_5(%arg0: i32) -> (i32, i32) {
    %c0_i32 = arith.constant 0 : i32
    %c0_i32_0 = arith.constant 0 : i32
    %c0_i32_1 = arith.constant 0 : i32
    return %c0_i32, %c0_i32_0 : i32, i32
  }
  func.func @transform_6(%arg0: i32) -> (i32, i32) {
    %c0_i32 = arith.constant 0 : i32
    %c0_i32_0 = arith.constant 0 : i32
    return %arg0, %c0_i32 : i32, i32
  }
}

module attributes {stable_mosaic.version = 11 : i64} {
  func.func @_pass1_conv_stats_kernel(%arg0: i32, %arg1: memref<1x18x18x128xf32, #tpu.memory_space<vmem>>, %arg2: memref<9x128x128xf32, #tpu.memory_space<vmem>>, %arg3: memref<1x128xf32, #tpu.memory_space<vmem>>, %arg4: memref<256x128xf32, #tpu.memory_space<vmem>>, %arg5: memref<1x128xf32, #tpu.memory_space<vmem>>, %arg6: memref<1x128xf32, #tpu.memory_space<vmem>>) attributes {dimension_semantics = [#tpu.dimension_semantics<arbitrary>], iteration_bounds = array<i64: 2>, scalar_prefetch = 0 : i64, scratch_operands = 0 : i64, tpu.core_type = #tpu.core_type<tc>, window_params = [{transform_indices = @transform_0, window_bounds = array<i64: 1, 18, 18, 128>}, {pipeline_mode = #tpu.pipeline_mode<synchronous>, transform_indices = @transform_1, window_bounds = array<i64: 9, 128, 128>}, {pipeline_mode = #tpu.pipeline_mode<synchronous>, transform_indices = @transform_2, window_bounds = array<i64: 1, 128>}, {transform_indices = @transform_3, window_bounds = array<i64: 256, 128>}, {pipeline_mode = #tpu.pipeline_mode<synchronous>, transform_indices = @transform_4, window_bounds = array<i64: 1, 128>}, {pipeline_mode = #tpu.pipeline_mode<synchronous>, transform_indices = @transform_5, window_bounds = array<i64: 1, 128>}]} {
    %cst = arith.constant 0.000000e+00 : f32
    %0 = vector.broadcast %cst : f32 to vector<256x128xf32>
    %c0 = arith.constant 0 : index
    %c0_0 = arith.constant 0 : index
    %c0_1 = arith.constant 0 : index
    %c0_2 = arith.constant 0 : index
    %1 = vector.load %arg1[%c0, %c0_0, %c0_1, %c0_2] : memref<1x18x18x128xf32, #tpu.memory_space<vmem>>, vector<1x16x16x128xf32>
    %2 = vector.shape_cast %1 : vector<1x16x16x128xf32> to vector<16x16x128xf32>
    %3 = vector.shape_cast %2 : vector<16x16x128xf32> to vector<256x128xf32>
    %c0_3 = arith.constant 0 : index
    %c0_4 = arith.constant 0 : index
    %c0_5 = arith.constant 0 : index
    %4 = vector.load %arg2[%c0_3, %c0_4, %c0_5] : memref<9x128x128xf32, #tpu.memory_space<vmem>>, vector<1x128x128xf32>
    %5 = vector.shape_cast %4 : vector<1x128x128xf32> to vector<128x128xf32>
    %cst_6 = arith.constant dense<0.000000e+00> : vector<256x128xf32>
    %6 = tpu.matmul %3, %5, %cst_6 {dimension_numbers = #tpu.dot_dimension_numbers<[1], [0], [0], [1], [0, 0, 1, 1], [], []>} : vector<256x128xf32>, vector<128x128xf32>, vector<256x128xf32> -> vector<256x128xf32>
    %7 = arith.addf %0, %6 : vector<256x128xf32>
    %c0_7 = arith.constant 0 : index
    %c0_8 = arith.constant 0 : index
    %c1 = arith.constant 1 : index
    %c0_9 = arith.constant 0 : index
    %8 = vector.load %arg1[%c0_7, %c0_8, %c1, %c0_9] : memref<1x18x18x128xf32, #tpu.memory_space<vmem>>, vector<1x16x16x128xf32>
    %9 = vector.shape_cast %8 : vector<1x16x16x128xf32> to vector<16x16x128xf32>
    %10 = vector.shape_cast %9 : vector<16x16x128xf32> to vector<256x128xf32>
    %c1_10 = arith.constant 1 : index
    %c0_11 = arith.constant 0 : index
    %c0_12 = arith.constant 0 : index
    %11 = vector.load %arg2[%c1_10, %c0_11, %c0_12] : memref<9x128x128xf32, #tpu.memory_space<vmem>>, vector<1x128x128xf32>
    %12 = vector.shape_cast %11 : vector<1x128x128xf32> to vector<128x128xf32>
    %cst_13 = arith.constant dense<0.000000e+00> : vector<256x128xf32>
    %13 = tpu.matmul %10, %12, %cst_13 {dimension_numbers = #tpu.dot_dimension_numbers<[1], [0], [0], [1], [0, 0, 1, 1], [], []>} : vector<256x128xf32>, vector<128x128xf32>, vector<256x128xf32> -> vector<256x128xf32>
    %14 = arith.addf %7, %13 : vector<256x128xf32>
    %c0_14 = arith.constant 0 : index
    %c0_15 = arith.constant 0 : index
    %c2 = arith.constant 2 : index
    %c0_16 = arith.constant 0 : index
    %15 = vector.load %arg1[%c0_14, %c0_15, %c2, %c0_16] : memref<1x18x18x128xf32, #tpu.memory_space<vmem>>, vector<1x16x16x128xf32>
    %16 = vector.shape_cast %15 : vector<1x16x16x128xf32> to vector<16x16x128xf32>
    %17 = vector.shape_cast %16 : vector<16x16x128xf32> to vector<256x128xf32>
    %c2_17 = arith.constant 2 : index
    %c0_18 = arith.constant 0 : index
    %c0_19 = arith.constant 0 : index
    %18 = vector.load %arg2[%c2_17, %c0_18, %c0_19] : memref<9x128x128xf32, #tpu.memory_space<vmem>>, vector<1x128x128xf32>
    %19 = vector.shape_cast %18 : vector<1x128x128xf32> to vector<128x128xf32>
    %cst_20 = arith.constant dense<0.000000e+00> : vector<256x128xf32>
    %20 = tpu.matmul %17, %19, %cst_20 {dimension_numbers = #tpu.dot_dimension_numbers<[1], [0], [0], [1], [0, 0, 1, 1], [], []>} : vector<256x128xf32>, vector<128x128xf32>, vector<256x128xf32> -> vector<256x128xf32>
    %21 = arith.addf %14, %20 : vector<256x128xf32>
    %c0_21 = arith.constant 0 : index
    %c1_22 = arith.constant 1 : index
    %c0_23 = arith.constant 0 : index
    %c0_24 = arith.constant 0 : index
    %22 = vector.load %arg1[%c0_21, %c1_22, %c0_23, %c0_24] : memref<1x18x18x128xf32, #tpu.memory_space<vmem>>, vector<1x16x16x128xf32>
    %23 = vector.shape_cast %22 : vector<1x16x16x128xf32> to vector<16x16x128xf32>
    %24 = vector.shape_cast %23 : vector<16x16x128xf32> to vector<256x128xf32>
    %c3 = arith.constant 3 : index
    %c0_25 = arith.constant 0 : index
    %c0_26 = arith.constant 0 : index
    %25 = vector.load %arg2[%c3, %c0_25, %c0_26] : memref<9x128x128xf32, #tpu.memory_space<vmem>>, vector<1x128x128xf32>
    %26 = vector.shape_cast %25 : vector<1x128x128xf32> to vector<128x128xf32>
    %cst_27 = arith.constant dense<0.000000e+00> : vector<256x128xf32>
    %27 = tpu.matmul %24, %26, %cst_27 {dimension_numbers = #tpu.dot_dimension_numbers<[1], [0], [0], [1], [0, 0, 1, 1], [], []>} : vector<256x128xf32>, vector<128x128xf32>, vector<256x128xf32> -> vector<256x128xf32>
    %28 = arith.addf %21, %27 : vector<256x128xf32>
    %c0_28 = arith.constant 0 : index
    %c1_29 = arith.constant 1 : index
    %c1_30 = arith.constant 1 : index
    %c0_31 = arith.constant 0 : index
    %29 = vector.load %arg1[%c0_28, %c1_29, %c1_30, %c0_31] : memref<1x18x18x128xf32, #tpu.memory_space<vmem>>, vector<1x16x16x128xf32>
    %30 = vector.shape_cast %29 : vector<1x16x16x128xf32> to vector<16x16x128xf32>
    %31 = vector.shape_cast %30 : vector<16x16x128xf32> to vector<256x128xf32>
    %c4 = arith.constant 4 : index
    %c0_32 = arith.constant 0 : index
    %c0_33 = arith.constant 0 : index
    %32 = vector.load %arg2[%c4, %c0_32, %c0_33] : memref<9x128x128xf32, #tpu.memory_space<vmem>>, vector<1x128x128xf32>
    %33 = vector.shape_cast %32 : vector<1x128x128xf32> to vector<128x128xf32>
    %cst_34 = arith.constant dense<0.000000e+00> : vector<256x128xf32>
    %34 = tpu.matmul %31, %33, %cst_34 {dimension_numbers = #tpu.dot_dimension_numbers<[1], [0], [0], [1], [0, 0, 1, 1], [], []>} : vector<256x128xf32>, vector<128x128xf32>, vector<256x128xf32> -> vector<256x128xf32>
    %35 = arith.addf %28, %34 : vector<256x128xf32>
    %c0_35 = arith.constant 0 : index
    %c1_36 = arith.constant 1 : index
    %c2_37 = arith.constant 2 : index
    %c0_38 = arith.constant 0 : index
    %36 = vector.load %arg1[%c0_35, %c1_36, %c2_37, %c0_38] : memref<1x18x18x128xf32, #tpu.memory_space<vmem>>, vector<1x16x16x128xf32>
    %37 = vector.shape_cast %36 : vector<1x16x16x128xf32> to vector<16x16x128xf32>
    %38 = vector.shape_cast %37 : vector<16x16x128xf32> to vector<256x128xf32>
    %c5 = arith.constant 5 : index
    %c0_39 = arith.constant 0 : index
    %c0_40 = arith.constant 0 : index
    %39 = vector.load %arg2[%c5, %c0_39, %c0_40] : memref<9x128x128xf32, #tpu.memory_space<vmem>>, vector<1x128x128xf32>
    %40 = vector.shape_cast %39 : vector<1x128x128xf32> to vector<128x128xf32>
    %cst_41 = arith.constant dense<0.000000e+00> : vector<256x128xf32>
    %41 = tpu.matmul %38, %40, %cst_41 {dimension_numbers = #tpu.dot_dimension_numbers<[1], [0], [0], [1], [0, 0, 1, 1], [], []>} : vector<256x128xf32>, vector<128x128xf32>, vector<256x128xf32> -> vector<256x128xf32>
    %42 = arith.addf %35, %41 : vector<256x128xf32>
    %c0_42 = arith.constant 0 : index
    %c2_43 = arith.constant 2 : index
    %c0_44 = arith.constant 0 : index
    %c0_45 = arith.constant 0 : index
    %43 = vector.load %arg1[%c0_42, %c2_43, %c0_44, %c0_45] : memref<1x18x18x128xf32, #tpu.memory_space<vmem>>, vector<1x16x16x128xf32>
    %44 = vector.shape_cast %43 : vector<1x16x16x128xf32> to vector<16x16x128xf32>
    %45 = vector.shape_cast %44 : vector<16x16x128xf32> to vector<256x128xf32>
    %c6 = arith.constant 6 : index
    %c0_46 = arith.constant 0 : index
    %c0_47 = arith.constant 0 : index
    %46 = vector.load %arg2[%c6, %c0_46, %c0_47] : memref<9x128x128xf32, #tpu.memory_space<vmem>>, vector<1x128x128xf32>
    %47 = vector.shape_cast %46 : vector<1x128x128xf32> to vector<128x128xf32>
    %cst_48 = arith.constant dense<0.000000e+00> : vector<256x128xf32>
    %48 = tpu.matmul %45, %47, %cst_48 {dimension_numbers = #tpu.dot_dimension_numbers<[1], [0], [0], [1], [0, 0, 1, 1], [], []>} : vector<256x128xf32>, vector<128x128xf32>, vector<256x128xf32> -> vector<256x128xf32>
    %49 = arith.addf %42, %48 : vector<256x128xf32>
    %c0_49 = arith.constant 0 : index
    %c2_50 = arith.constant 2 : index
    %c1_51 = arith.constant 1 : index
    %c0_52 = arith.constant 0 : index
    %50 = vector.load %arg1[%c0_49, %c2_50, %c1_51, %c0_52] : memref<1x18x18x128xf32, #tpu.memory_space<vmem>>, vector<1x16x16x128xf32>
    %51 = vector.shape_cast %50 : vector<1x16x16x128xf32> to vector<16x16x128xf32>
    %52 = vector.shape_cast %51 : vector<16x16x128xf32> to vector<256x128xf32>
    %c7 = arith.constant 7 : index
    %c0_53 = arith.constant 0 : index
    %c0_54 = arith.constant 0 : index
    %53 = vector.load %arg2[%c7, %c0_53, %c0_54] : memref<9x128x128xf32, #tpu.memory_space<vmem>>, vector<1x128x128xf32>
    %54 = vector.shape_cast %53 : vector<1x128x128xf32> to vector<128x128xf32>
    %cst_55 = arith.constant dense<0.000000e+00> : vector<256x128xf32>
    %55 = tpu.matmul %52, %54, %cst_55 {dimension_numbers = #tpu.dot_dimension_numbers<[1], [0], [0], [1], [0, 0, 1, 1], [], []>} : vector<256x128xf32>, vector<128x128xf32>, vector<256x128xf32> -> vector<256x128xf32>
    %56 = arith.addf %49, %55 : vector<256x128xf32>
    %c0_56 = arith.constant 0 : index
    %c2_57 = arith.constant 2 : index
    %c2_58 = arith.constant 2 : index
    %c0_59 = arith.constant 0 : index
    %57 = vector.load %arg1[%c0_56, %c2_57, %c2_58, %c0_59] : memref<1x18x18x128xf32, #tpu.memory_space<vmem>>, vector<1x16x16x128xf32>
    %58 = vector.shape_cast %57 : vector<1x16x16x128xf32> to vector<16x16x128xf32>
    %59 = vector.shape_cast %58 : vector<16x16x128xf32> to vector<256x128xf32>
    %c8 = arith.constant 8 : index
    %c0_60 = arith.constant 0 : index
    %c0_61 = arith.constant 0 : index
    %60 = vector.load %arg2[%c8, %c0_60, %c0_61] : memref<9x128x128xf32, #tpu.memory_space<vmem>>, vector<1x128x128xf32>
    %61 = vector.shape_cast %60 : vector<1x128x128xf32> to vector<128x128xf32>
    %cst_62 = arith.constant dense<0.000000e+00> : vector<256x128xf32>
    %62 = tpu.matmul %59, %61, %cst_62 {dimension_numbers = #tpu.dot_dimension_numbers<[1], [0], [0], [1], [0, 0, 1, 1], [], []>} : vector<256x128xf32>, vector<128x128xf32>, vector<256x128xf32> -> vector<256x128xf32>
    %63 = arith.addf %56, %62 : vector<256x128xf32>
    %c0_63 = arith.constant 0 : index
    %c0_64 = arith.constant 0 : index
    %64 = vector.load %arg3[%c0_63, %c0_64] : memref<1x128xf32, #tpu.memory_space<vmem>>, vector<1x128xf32>
    %65 = vector.broadcast %64 : vector<1x128xf32> to vector<256x128xf32>
    %66 = arith.addf %63, %65 : vector<256x128xf32>
    %c0_65 = arith.constant 0 : index
    %c0_66 = arith.constant 0 : index
    %67 = vector.load %arg4[%c0_65, %c0_66] : memref<256x128xf32, #tpu.memory_space<vmem>>, vector<256x128xf32>
    tpu.vector_store %arg4[%c0_65, %c0_66], %66 {strides = array<i32>} : memref<256x128xf32, #tpu.memory_space<vmem>>, vector<256x128xf32>,
    %c0_i32 = arith.constant 0 : i32
    %68 = arith.cmpi eq, %arg0, %c0_i32 : i32
    %69 = arith.extui %68 : i1 to i32
    %c0_i32_67 = arith.constant 0 : i32
    %70 = arith.cmpi ne, %69, %c0_i32_67 : i32
    scf.if %70 {
      %cst_78 = arith.constant 0.000000e+00 : f32
      %82 = vector.broadcast %cst_78 : f32 to vector<1x128xf32>
      %c0_79 = arith.constant 0 : index
      %c0_80 = arith.constant 0 : index
      %83 = vector.load %arg5[%c0_79, %c0_80] : memref<1x128xf32, #tpu.memory_space<vmem>>, vector<1x128xf32>
      tpu.vector_store %arg5[%c0_79, %c0_80], %82 {strides = array<i32>} : memref<1x128xf32, #tpu.memory_space<vmem>>, vector<1x128xf32>,
      %cst_81 = arith.constant 0.000000e+00 : f32
      %84 = vector.broadcast %cst_81 : f32 to vector<1x128xf32>
      %c0_82 = arith.constant 0 : index
      %c0_83 = arith.constant 0 : index
      %85 = vector.load %arg6[%c0_82, %c0_83] : memref<1x128xf32, #tpu.memory_space<vmem>>, vector<1x128xf32>
      tpu.vector_store %arg6[%c0_82, %c0_83], %84 {strides = array<i32>} : memref<1x128xf32, #tpu.memory_space<vmem>>, vector<1x128xf32>,
    } else {
    }
    %c0_68 = arith.constant 0 : index
    %c0_69 = arith.constant 0 : index
    %71 = vector.load %arg5[%c0_68, %c0_69] : memref<1x128xf32, #tpu.memory_space<vmem>>, vector<1x128xf32>
    %cst_70 = arith.constant dense<0.000000e+00> : vector<128xf32>
    %72 = vector.multi_reduction <add>, %66, %cst_70 [0] : vector<256x128xf32> to vector<128xf32>
    %73 = vector.shape_cast %72 : vector<128xf32> to vector<1x128xf32>
    %74 = arith.addf %71, %73 : vector<1x128xf32>
    %c0_71 = arith.constant 0 : index
    %c0_72 = arith.constant 0 : index
    %75 = vector.load %arg5[%c0_71, %c0_72] : memref<1x128xf32, #tpu.memory_space<vmem>>, vector<1x128xf32>
    tpu.vector_store %arg5[%c0_71, %c0_72], %74 {strides = array<i32>} : memref<1x128xf32, #tpu.memory_space<vmem>>, vector<1x128xf32>,
    %c0_73 = arith.constant 0 : index
    %c0_74 = arith.constant 0 : index
    %76 = vector.load %arg6[%c0_73, %c0_74] : memref<1x128xf32, #tpu.memory_space<vmem>>, vector<1x128xf32>
    %77 = arith.mulf %66, %66 : vector<256x128xf32>
    %cst_75 = arith.constant dense<0.000000e+00> : vector<128xf32>
    %78 = vector.multi_reduction <add>, %77, %cst_75 [0] : vector<256x128xf32> to vector<128xf32>
    %79 = vector.shape_cast %78 : vector<128xf32> to vector<1x128xf32>
    %80 = arith.addf %76, %79 : vector<1x128xf32>
    %c0_76 = arith.constant 0 : index
    %c0_77 = arith.constant 0 : index
    %81 = vector.load %arg6[%c0_76, %c0_77] : memref<1x128xf32, #tpu.memory_space<vmem>>, vector<1x128xf32>
    tpu.vector_store %arg6[%c0_76, %c0_77], %80 {strides = array<i32>} : memref<1x128xf32, #tpu.memory_space<vmem>>, vector<1x128xf32>,
    return
  }
  func.func @transform_0(%arg0: i32) -> (i32, i32, i32, i32) {
    %c0_i32 = arith.constant 0 : i32
    %c0_i32_0 = arith.constant 0 : i32
    %c0_i32_1 = arith.constant 0 : i32
    %c0_i32_2 = arith.constant 0 : i32
    return %arg0, %c0_i32, %c0_i32_0, %c0_i32_1 : i32, i32, i32, i32
  }
  func.func @transform_1(%arg0: i32) -> (i32, i32, i32) {
    %c0_i32 = arith.constant 0 : i32
    %c0_i32_0 = arith.constant 0 : i32
    %c0_i32_1 = arith.constant 0 : i32
    %c0_i32_2 = arith.constant 0 : i32
    return %c0_i32, %c0_i32_0, %c0_i32_1 : i32, i32, i32
  }
  func.func @transform_2(%arg0: i32) -> (i32, i32) {
    %c0_i32 = arith.constant 0 : i32
    %c0_i32_0 = arith.constant 0 : i32
    %c0_i32_1 = arith.constant 0 : i32
    return %c0_i32, %c0_i32_0 : i32, i32
  }
  func.func @transform_3(%arg0: i32) -> (i32, i32) {
    %c0_i32 = arith.constant 0 : i32
    %c0_i32_0 = arith.constant 0 : i32
    return %arg0, %c0_i32 : i32, i32
  }
  func.func @transform_4(%arg0: i32) -> (i32, i32) {
    %c0_i32 = arith.constant 0 : i32
    %c0_i32_0 = arith.constant 0 : i32
    %c0_i32_1 = arith.constant 0 : i32
    return %c0_i32, %c0_i32_0 : i32, i32
  }
  func.func @transform_5(%arg0: i32) -> (i32, i32) {
    %c0_i32 = arith.constant 0 : i32
    %c0_i32_0 = arith.constant 0 : i32
    %c0_i32_1 = arith.constant 0 : i32
    return %c0_i32, %c0_i32_0 : i32, i32
  }
}

</mosaic_0001>

<bundles_post_ra>
// kernel: residual_block.3
= control target key start
LH: loop header
LB: loop body
LE: loop exit
PB: predicated region body
PF: predicated region fallthrough
CT: control target
= control target key end

     0   :  { %v101_v7 = vlaneseq  ;;  %s1257_s2 = inlined_call_operand.vmem [shape: f32[1,128], index: 2, kind: input, shape index: {}]   ;;  %s1258_s3 = inlined_call_operand.vmem [shape: f32[1,128], index: 3, kind: input, shape index: {}]   ;;  %s1259_s4 = inlined_call_operand.vmem [shape: f32[1,128], index: 4, kind: input, shape index: {}]   ;;  %s1260_s0 = inlined_call_operand.vmem [shape: f32[512,128], index: 0, kind: input, shape index: {}]   ;;  %s1261_s5 = inlined_call_operand.vmem [shape: f32[1,128], index: 5, kind: input, shape index: {}]   ;;  %s1262_s1 = inlined_call_operand.vmem [shape: f32[512,128], index: 1, kind: input, shape index: {}]   ;;  %s1263_s6 = inlined_call_operand.vmem [shape: f32[512,128], index: 6, kind: output, shape index: {}]  }
   0x1   :  { %v23_v0 = vld [vmem:[%s1257_s2] sm:$0x1]  ;;  %v37_v15 = vld [vmem:[%s1260_s0 + $0x8] sm:$0xff]  ;;  %v38_v16 = vld [vmem:[%s1260_s0 + $0x10] sm:$0xff] }
   0x2   :  { %v25_v1 = vld [vmem:[%s1258_s3] sm:$0x1]  ;;  %v24_v2 = vmul.f32 0.001953125, %v23_v0  ;;  %v102_v8 = vshrl.u32 %v101_v7, 7  ;;  %v39_v17 = vld [vmem:[%s1260_s0 + $0x18] sm:$0xff]  ;;  %v41_v21 = vld [vmem:[%s1260_s0 + $0x28] sm:$0xff] }
   0x3   :  { %v26_v3 = vmul.f32 0.001953125, %v25_v1  ;;  %v31_v9 = vld [vmem:[%s1259_s4] sm:$0x1]  ;;  %v42_v22 = vld [vmem:[%s1260_s0 + $0x30] sm:$0xff]  ;;  %v43_v23 = vld [vmem:[%s1260_s0 + $0x38] sm:$0xff] }
   0x4   :  { %v27_v4 = vmul.f32 %v24_v2, %v24_v2  ;;  %v103_v10 = vsub.s32 0, %v102_v8  ;;  %v33_v13 = vld [vmem:[%s1261_s5] sm:$0x1]  ;;  %v45_v25 = vld [vmem:[%s1260_s0 + $0x48] sm:$0xff]  ;;  %v46_v26 = vld [vmem:[%s1260_s0 + $0x50] sm:$0xff] }
   0x5   :  { %v36_v14 = vld [vmem:[%s1260_s0] sm:$0xff]  ;;  %v47_v31 = vld [vmem:[%s1260_s0 + $0x58] sm:$0xff]  ;;  %v49_v33 = vld [vmem:[%s1260_s0 + $0x68] sm:$0xff] }
   0x6   :  { %v28_v5 = vsub.f32 %v26_v3, %v27_v4  ;;  %v40_v18 = vld [vmem:[%s1260_s0 + $0x20] sm:$0xff]  ;;  %v305_v49 = vld [vmem:[%s1262_s1 + $0x8] sm:$0xff]  ;;  %v306_v51 = vld [vmem:[%s1262_s1 + $0x10] sm:$0xff] }
   0x7   :  { %v44_v24 = vld [vmem:[%s1260_s0 + $0x40] sm:$0xff]  ;;  %v307_v53 = vld [vmem:[%s1262_s1 + $0x18] sm:$0xff]  ;;  %v309_v57 = vld [vmem:[%s1262_s1 + $0x28] sm:$0xff] }
   0x8   :  { %v29_v6 = vadd.f32 1e-05, %v28_v5  ;;  %v48_v32 = vld [vmem:[%s1260_s0 + $0x60] sm:$0xff]  ;;  %v310_v0 = vld [vmem:[%s1262_s1 + $0x30] sm:$0xff]  ;;  %v311_v1 = vld [vmem:[%s1262_s1 + $0x38] sm:$0xff] }
   0x9   :  { %v304_v47 = vld [vmem:[%s1262_s1] sm:$0xff] }
   0xa   :  { %500 = vrsqrt.f32 %v29_v6  ;;  %v308_v55 = vld [vmem:[%s1262_s1 + $0x20] sm:$0xff] }
  0x14   :  { %v501_v11 = vpop.eup %500 }
  0x15   :  { %v32_v12 = vmul.f32 %v501_v11, %v31_v9  ;;  %v51_v11 = vld [vmem:[%s1260_s0 + $0x78] sm:$0xff] }
  0x17   :  { %v34_v19 = vmul.f32 %v32_v12, %v24_v2  ;;  %v564_v20 = vrot.slane %v32_v12, %v103_v10 }
  0x19   :  { %v35_v27 = vsub.f32 %v33_v13, %v34_v19  ;;  %v106_v28 = vmul.f32 %v564_v20, %v36_v14  ;;  %v107_v29 = vmul.f32 %v564_v20, %v37_v15  ;;  %v108_v30 = vmul.f32 %v564_v20, %v38_v16  ;;  %v313_v19 = vld [vmem:[%s1262_s1 + $0x48] sm:$0xff] }
  0x1a   :  { %v109_v34 = vmul.f32 %v564_v20, %v39_v17  ;;  %v110_v35 = vmul.f32 %v564_v20, %v40_v18  ;;  %v111_v36 = vmul.f32 %v564_v20, %v41_v21  ;;  %v112_v37 = vmul.f32 %v564_v20, %v42_v22  ;;  %v312_v17 = vld [vmem:[%s1262_s1 + $0x40] sm:$0xff]  ;;  %v314_v22 = vld [vmem:[%s1262_s1 + $0x50] sm:$0xff] }
  0x1b   :  { %v600_v38 = vrot.slane %v35_v27, %v103_v10  ;;  %v113_v39 = vmul.f32 %v564_v20, %v43_v23  ;;  %v114_v40 = vmul.f32 %v564_v20, %v44_v24  ;;  %v115_v41 = vmul.f32 %v564_v20, %v45_v25  ;;  %v50_v10 = vld [vmem:[%s1260_s0 + $0x70] sm:$0xff]  ;;  %v315_v24 = vld [vmem:[%s1262_s1 + $0x58] sm:$0xff] }
  0x1c   :  { %v116_v42 = vmul.f32 %v564_v20, %v46_v26  ;;  %v117_v43 = vmul.f32 %v564_v20, %v47_v31  ;;  %v118_v44 = vmul.f32 %v564_v20, %v48_v32  ;;  %v119_v45 = vmul.f32 %v564_v20, %v49_v33  ;;  %v316_v26 = vld [vmem:[%s1262_s1 + $0x60] sm:$0xff] }
  0x1d   :  { %v176_v46 = vadd.f32 %v600_v38, %v106_v28  ;;  %v177_v48 = vadd.f32 %v600_v38, %v107_v29  ;;  %v178_v50 = vadd.f32 %v600_v38, %v108_v30  ;;  %v179_v52 = vadd.f32 %v600_v38, %v109_v34  ;;  %v317_v28 = vld [vmem:[%s1262_s1 + $0x68] sm:$0xff] }
  0x1e   :  { %v180_v54 = vadd.f32 %v600_v38, %v110_v35  ;;  %v181_v56 = vadd.f32 %v600_v38, %v111_v36  ;;  %v182_v58 = vadd.f32 %v600_v38, %v112_v37  ;;  %v183_v59 = vadd.f32 %v600_v38, %v113_v39  ;;  %v318_v35 = vld [vmem:[%s1262_s1 + $0x70] sm:$0xff]  ;;  %v52_v36 = vld [vmem:[%s1260_s0 + $0x80] sm:$0xff] }
  0x1f   :  { %v240_v60 = vmax.f32 %v176_v46, 0.0  ;;  %v241_v61 = vmax.f32 %v177_v48, 0.0  ;;  %v242_v62 = vmax.f32 %v178_v50, 0.0  ;;  %v243_v63 = vmax.f32 %v179_v52, 0.0  ;;  %v56_v50 = vld [vmem:[%s1260_s0 + $0xa0] sm:$0xff] }
  0x20   :  { %v244_v2 = vmax.f32 %v180_v54, 0.0  ;;  %v245_v3 = vmax.f32 %v181_v56, 0.0  ;;  %v246_v4 = vmax.f32 %v182_v58, 0.0  ;;  %v247_v5 = vmax.f32 %v183_v59, 0.0 }
  0x21   :  { %v368_v6 = vadd.f32 %v304_v47, %v240_v60  ;;  %v369_v7 = vadd.f32 %v305_v49, %v241_v61  ;;  %v370_v8 = vadd.f32 %v306_v51, %v242_v62  ;;  %v371_v9 = vadd.f32 %v307_v53, %v243_v63  ;;  %v319_v49 = vld [vmem:[%s1262_s1 + $0x78] sm:$0xff]  ;;  %v57_v51 = vld [vmem:[%s1260_s0 + $0xa8] sm:$0xff]  ;;  %v58_v60 = vld [vmem:[%s1260_s0 + $0xb0] sm:$0xff] }
  0x22   :  { %v372_v12 = vadd.f32 %v308_v55, %v244_v2  ;;  %v373_v13 = vadd.f32 %v309_v57, %v245_v3  ;;  %v374_v14 = vadd.f32 %v310_v0, %v246_v4  ;;  %v375_v15 = vadd.f32 %v311_v1, %v247_v5  ;;  %v59_v61 = vld [vmem:[%s1260_s0 + $0xb8] sm:$0xff]  ;;  %v320_v3 = vld [vmem:[%s1262_s1 + $0x80] sm:$0xff]  ;;  %v321_v5 = vld [vmem:[%s1262_s1 + $0x88] sm:$0xff] }
  0x23   :  { %432 = vst [vmem:[%s1263_s6] sm:$0xff] %v368_v6  ;;  %433 = vst [vmem:[%s1263_s6 + $0x8] sm:$0xff] %v369_v7  ;;  %v184_v16 = vadd.f32 %v600_v38, %v114_v40  ;;  %v185_v18 = vadd.f32 %v600_v38, %v115_v41  ;;  %v186_v21 = vadd.f32 %v600_v38, %v116_v42  ;;  %v53_v42 = vld [vmem:[%s1260_s0 + $0x88] sm:$0xff]  ;;  %v322_v7 = vld [vmem:[%s1262_s1 + $0x90] sm:$0xff] }
  0x24   :  { %434 = vst [vmem:[%s1263_s6 + $0x10] sm:$0xff] %v370_v8  ;;  %435 = vst [vmem:[%s1263_s6 + $0x18] sm:$0xff] %v371_v9  ;;  %v187_v23 = vadd.f32 %v600_v38, %v117_v43  ;;  %v188_v25 = vadd.f32 %v600_v38, %v118_v44  ;;  %v189_v27 = vadd.f32 %v600_v38, %v119_v45  ;;  %v54_v43 = vld [vmem:[%s1260_s0 + $0x90] sm:$0xff]  ;;  %v55_v44 = vld [vmem:[%s1260_s0 + $0x98] sm:$0xff] }
  0x25   :  { %436 = vst [vmem:[%s1263_s6 + $0x20] sm:$0xff] %v372_v12  ;;  %437 = vst [vmem:[%s1263_s6 + $0x28] sm:$0xff] %v373_v13  ;;  %v120_v29 = vmul.f32 %v564_v20, %v50_v10  ;;  %v121_v30 = vmul.f32 %v564_v20, %v51_v11  ;;  %v248_v31 = vmax.f32 %v184_v16, 0.0  ;;  %v249_v32 = vmax.f32 %v185_v18, 0.0  ;;  %v323_v9 = vld [vmem:[%s1262_s1 + $0x98] sm:$0xff]  ;;  %v324_v11 = vld [vmem:[%s1262_s1 + $0xa0] sm:$0xff] }
  0x26   :  { %438 = vst [vmem:[%s1263_s6 + $0x30] sm:$0xff] %v374_v14  ;;  %439 = vst [vmem:[%s1263_s6 + $0x38] sm:$0xff] %v375_v15  ;;  %v250_v33 = vmax.f32 %v186_v21, 0.0  ;;  %v251_v34 = vmax.f32 %v187_v23, 0.0  ;;  %v252_v37 = vmax.f32 %v188_v25, 0.0  ;;  %v253_v39 = vmax.f32 %v189_v27, 0.0 }
  0x27   :  { %v190_v40 = vadd.f32 %v600_v38, %v120_v29  ;;  %v191_v41 = vadd.f32 %v600_v38, %v121_v30  ;;  %v376_v45 = vadd.f32 %v312_v17, %v248_v31  ;;  %v377_v46 = vadd.f32 %v313_v19, %v249_v32  ;;  %v325_v13 = vld [vmem:[%s1262_s1 + $0xa8] sm:$0xff]  ;;  %v326_v21 = vld [vmem:[%s1262_s1 + $0xb0] sm:$0xff]  ;;  %v63_v29 = vld [vmem:[%s1260_s0 + $0xd8] sm:$0xff] }
  0x28   :  { %v378_v47 = vadd.f32 %v314_v22, %v250_v33  ;;  %v379_v48 = vadd.f32 %v315_v24, %v251_v34  ;;  %v380_v52 = vadd.f32 %v316_v26, %v252_v37  ;;  %v381_v53 = vadd.f32 %v317_v28, %v253_v39  ;;  %v60_v22 = vld [vmem:[%s1260_s0 + $0xc0] sm:$0xff]  ;;  %v61_v27 = vld [vmem:[%s1260_s0 + $0xc8] sm:$0xff]  ;;  %v62_v28 = vld [vmem:[%s1260_s0 + $0xd0] sm:$0xff] }
  0x29   :  { %v254_v54 = vmax.f32 %v190_v40, 0.0  ;;  %v255_v55 = vmax.f32 %v191_v41, 0.0  ;;  %440 = vst [vmem:[%s1263_s6 + $0x40] sm:$0xff] %v376_v45  ;;  %441 = vst [vmem:[%s1263_s6 + $0x48] sm:$0xff] %v377_v46  ;;  %v122_v56 = vmul.f32 %v564_v20, %v52_v36  ;;  %v123_v57 = vmul.f32 %v564_v20, %v53_v42  ;;  %v327_v34 = vld [vmem:[%s1262_s1 + $0xb8] sm:$0xff]  ;;  %v65_v36 = vld [vmem:[%s1260_s0 + $0xe8] sm:$0xff] }
  0x2a   :  { %442 = vst [vmem:[%s1263_s6 + $0x50] sm:$0xff] %v378_v47  ;;  %443 = vst [vmem:[%s1263_s6 + $0x58] sm:$0xff] %v379_v48  ;;  %v124_v58 = vmul.f32 %v564_v20, %v54_v43  ;;  %v125_v59 = vmul.f32 %v564_v20, %v55_v44  ;;  %v126_v0 = vmul.f32 %v564_v20, %v56_v50  ;;  %v66_v46 = vld [vmem:[%s1260_s0 + $0xf0] sm:$0xff]  ;;  %v67_v47 = vld [vmem:[%s1260_s0 + $0xf8] sm:$0xff] }
  0x2b   :  { %444 = vst [vmem:[%s1263_s6 + $0x60] sm:$0xff] %v380_v52  ;;  %445 = vst [vmem:[%s1263_s6 + $0x68] sm:$0xff] %v381_v53  ;;  %v382_v62 = vadd.f32 %v318_v35, %v254_v54  ;;  %v383_v63 = vadd.f32 %v319_v49, %v255_v55  ;;  %v127_v1 = vmul.f32 %v564_v20, %v57_v51  ;;  %v64_v35 = vld [vmem:[%s1260_s0 + $0xe0] sm:$0xff]  ;;  %v329_v55 = vld [vmem:[%s1262_s1 + $0xc8] sm:$0xff] }
  0x2c   :  { %v192_v2 = vadd.f32 %v600_v38, %v122_v56  ;;  %v193_v4 = vadd.f32 %v600_v38, %v123_v57  ;;  %v194_v6 = vadd.f32 %v600_v38, %v124_v58  ;;  %v195_v8 = vadd.f32 %v600_v38, %v125_v59  ;;  %v328_v53 = vld [vmem:[%s1262_s1 + $0xc0] sm:$0xff]  ;;  %v330_v57 = vld [vmem:[%s1262_s1 + $0xd0] sm:$0xff]  ;;  %v331_v59 = vld [vmem:[%s1262_s1 + $0xd8] sm:$0xff] }
  0x2d   :  { %446 = vst [vmem:[%s1263_s6 + $0x70] sm:$0xff] %v382_v62  ;;  %447 = vst [vmem:[%s1263_s6 + $0x78] sm:$0xff] %v383_v63  ;;  %v196_v10 = vadd.f32 %v600_v38, %v126_v0  ;;  %v197_v12 = vadd.f32 %v600_v38, %v127_v1  ;;  %v128_v14 = vmul.f32 %v564_v20, %v58_v60  ;;  %v333_v63 = vld [vmem:[%s1262_s1 + $0xe8] sm:$0xff] }
  0x2e   :  { %v129_v15 = vmul.f32 %v564_v20, %v59_v61  ;;  %v256_v16 = vmax.f32 %v192_v2, 0.0  ;;  %v257_v17 = vmax.f32 %v193_v4, 0.0  ;;  %v258_v18 = vmax.f32 %v194_v6, 0.0  ;;  %v332_v61 = vld [vmem:[%s1262_s1 + $0xe0] sm:$0xff]  ;;  %v334_v6 = vld [vmem:[%s1262_s1 + $0xf0] sm:$0xff] }
  0x2f   :  { %v259_v19 = vmax.f32 %v195_v8, 0.0  ;;  %v260_v23 = vmax.f32 %v196_v10, 0.0  ;;  %v261_v24 = vmax.f32 %v197_v12, 0.0  ;;  %v198_v25 = vadd.f32 %v600_v38, %v128_v14  ;;  %v69_v12 = vld [vmem:[%s1260_s0 + $0x108] sm:$0xff]  ;;  %v71_v14 = vld [vmem:[%s1260_s0 + $0x118] sm:$0xff] }
  0x30   :  { %v199_v26 = vadd.f32 %v600_v38, %v129_v15  ;;  %v384_v30 = vadd.f32 %v320_v3, %v256_v16  ;;  %v385_v31 = vadd.f32 %v321_v5, %v257_v17  ;;  %v386_v32 = vadd.f32 %v322_v7, %v258_v18  ;;  %v68_v7 = vld [vmem:[%s1260_s0 + $0x100] sm:$0xff] }
  0x31   :  { %v387_v33 = vadd.f32 %v323_v9, %v259_v19  ;;  %v388_v37 = vadd.f32 %v324_v11, %v260_v23  ;;  %v389_v39 = vadd.f32 %v325_v13, %v261_v24  ;;  %v262_v40 = vmax.f32 %v198_v25, 0.0  ;;  %v70_v13 = vld [vmem:[%s1260_s0 + $0x110] sm:$0xff]  ;;  %v335_v19 = vld [vmem:[%s1262_s1 + $0xf8] sm:$0xff] }
  0x32   :  { %v263_v41 = vmax.f32 %v199_v26, 0.0  ;;  %448 = vst [vmem:[%s1263_s6 + $0x80] sm:$0xff] %v384_v30  ;;  %449 = vst [vmem:[%s1263_s6 + $0x88] sm:$0xff] %v385_v31  ;;  %v130_v42 = vmul.f32 %v564_v20, %v60_v22  ;;  %v131_v43 = vmul.f32 %v564_v20, %v61_v27  ;;  %v132_v44 = vmul.f32 %v564_v20, %v62_v28  ;;  %v73_v22 = vld [vmem:[%s1260_s0 + $0x128] sm:$0xff]  ;;  %v74_v31 = vld [vmem:[%s1260_s0 + $0x130] sm:$0xff] }
  0x33   :  { %450 = vst [vmem:[%s1263_s6 + $0x90] sm:$0xff] %v386_v32  ;;  %451 = vst [vmem:[%s1263_s6 + $0x98] sm:$0xff] %v387_v33  ;;  %v133_v45 = vmul.f32 %v564_v20, %v63_v29  ;;  %v390_v48 = vadd.f32 %v326_v21, %v262_v40  ;;  %v134_v50 = vmul.f32 %v564_v20, %v64_v35  ;;  %v72_v21 = vld [vmem:[%s1260_s0 + $0x120] sm:$0xff]  ;;  %v75_v32 = vld [vmem:[%s1260_s0 + $0x138] sm:$0xff] }
  0x34   :  { %452 = vst [vmem:[%s1263_s6 + $0xa0] sm:$0xff] %v388_v37  ;;  %453 = vst [vmem:[%s1263_s6 + $0xa8] sm:$0xff] %v389_v39  ;;  %v391_v49 = vadd.f32 %v327_v34, %v263_v41  ;;  %v135_v51 = vmul.f32 %v564_v20, %v65_v36  ;;  %v200_v52 = vadd.f32 %v600_v38, %v130_v42  ;;  %v336_v39 = vld [vmem:[%s1262_s1 + $0x100] sm:$0xff]  ;;  %v337_v41 = vld [vmem:[%s1262_s1 + $0x108] sm:$0xff] }
  0x35   :  { %v201_v54 = vadd.f32 %v600_v38, %v131_v43  ;;  %v202_v56 = vadd.f32 %v600_v38, %v132_v44  ;;  %v203_v58 = vadd.f32 %v600_v38, %v133_v45  ;;  %454 = vst [vmem:[%s1263_s6 + $0xb0] sm:$0xff] %v390_v48  ;;  %v204_v60 = vadd.f32 %v600_v38, %v134_v50  ;;  %v338_v43 = vld [vmem:[%s1262_s1 + $0x110] sm:$0xff]  ;;  %v339_v45 = vld [vmem:[%s1262_s1 + $0x118] sm:$0xff] }
  0x36   :  { %455 = vst [vmem:[%s1263_s6 + $0xb8] sm:$0xff] %v391_v49  ;;  %v205_v62 = vadd.f32 %v600_v38, %v135_v51  ;;  %v136_v0 = vmul.f32 %v564_v20, %v66_v46  ;;  %v137_v1 = vmul.f32 %v564_v20, %v67_v47  ;;  %v264_v2 = vmax.f32 %v200_v52, 0.0  ;;  %v340_v47 = vld [vmem:[%s1262_s1 + $0x120] sm:$0xff]  ;;  %v341_v49 = vld [vmem:[%s1262_s1 + $0x128] sm:$0xff] }
  0x37   :  { %v265_v3 = vmax.f32 %v201_v54, 0.0  ;;  %v266_v4 = vmax.f32 %v202_v56, 0.0  ;;  %v267_v5 = vmax.f32 %v203_v58, 0.0  ;;  %v268_v8 = vmax.f32 %v204_v60, 0.0  ;;  %v342_v56 = vld [vmem:[%s1262_s1 + $0x130] sm:$0xff] }
  0x38   :  { %v269_v9 = vmax.f32 %v205_v62, 0.0  ;;  %v206_v10 = vadd.f32 %v600_v38, %v136_v0  ;;  %v207_v11 = vadd.f32 %v600_v38, %v137_v1  ;;  %v392_v15 = vadd.f32 %v328_v53, %v264_v2  ;;  %v77_v62 = vld [vmem:[%s1260_s0 + $0x148] sm:$0xff]  ;;  %v79_v0 = vld [vmem:[%s1260_s0 + $0x158] sm:$0xff] }
  0x39   :  { %v393_v16 = vadd.f32 %v329_v55, %v265_v3  ;;  %v394_v17 = vadd.f32 %v330_v57, %v266_v4  ;;  %v395_v18 = vadd.f32 %v331_v59, %v267_v5  ;;  %v396_v23 = vadd.f32 %v332_v61, %v268_v8  ;;  %v76_v57 = vld [vmem:[%s1260_s0 + $0x140] sm:$0xff]  ;;  %v343_v5 = vld [vmem:[%s1262_s1 + $0x138] sm:$0xff] }
  0x3a   :  { %v397_v24 = vadd.f32 %v333_v63, %v269_v9  ;;  %v270_v25 = vmax.f32 %v206_v10, 0.0  ;;  %v271_v26 = vmax.f32 %v207_v11, 0.0  ;;  %456 = vst [vmem:[%s1263_s6 + $0xc0] sm:$0xff] %v392_v15  ;;  %v138_v27 = vmul.f32 %v564_v20, %v68_v7  ;;  %v78_v63 = vld [vmem:[%s1260_s0 + $0x150] sm:$0xff]  ;;  %v81_v7 = vld [vmem:[%s1260_s0 + $0x168] sm:$0xff] }
  0x3b   :  { %457 = vst [vmem:[%s1263_s6 + $0xc8] sm:$0xff] %v393_v16  ;;  %458 = vst [vmem:[%s1263_s6 + $0xd0] sm:$0xff] %v394_v17  ;;  %v139_v28 = vmul.f32 %v564_v20, %v69_v12  ;;  %v140_v29 = vmul.f32 %v564_v20, %v70_v13  ;;  %v141_v30 = vmul.f32 %v564_v20, %v71_v14  ;;  %v82_v16 = vld [vmem:[%s1260_s0 + $0x170] sm:$0xff]  ;;  %v83_v17 = vld [vmem:[%s1260_s0 + $0x178] sm:$0xff] }
  0x3c   :  { %459 = vst [vmem:[%s1263_s6 + $0xd8] sm:$0xff] %v395_v18  ;;  %460 = vst [vmem:[%s1263_s6 + $0xe0] sm:$0xff] %v396_v23  ;;  %v398_v33 = vadd.f32 %v334_v6, %v270_v25  ;;  %v399_v34 = vadd.f32 %v335_v19, %v271_v26  ;;  %v142_v35 = vmul.f32 %v564_v20, %v72_v21  ;;  %v80_v6 = vld [vmem:[%s1260_s0 + $0x160] sm:$0xff]  ;;  %v345_v26 = vld [vmem:[%s1262_s1 + $0x148] sm:$0xff] }
  0x3d   :  { %461 = vst [vmem:[%s1263_s6 + $0xe8] sm:$0xff] %v397_v24  ;;  %v143_v36 = vmul.f32 %v564_v20, %v73_v22  ;;  %v208_v37 = vadd.f32 %v600_v38, %v138_v27  ;;  %v209_v40 = vadd.f32 %v600_v38, %v139_v28  ;;  %v210_v42 = vadd.f32 %v600_v38, %v140_v29  ;;  %v344_v24 = vld [vmem:[%s1262_s1 + $0x140] sm:$0xff]  ;;  %v346_v28 = vld [vmem:[%s1262_s1 + $0x150] sm:$0xff] }
  0x3e   :  { %v211_v44 = vadd.f32 %v600_v38, %v141_v30  ;;  %462 = vst [vmem:[%s1263_s6 + $0xf0] sm:$0xff] %v398_v33  ;;  %463 = vst [vmem:[%s1263_s6 + $0xf8] sm:$0xff] %v399_v34  ;;  %v212_v46 = vadd.f32 %v600_v38, %v142_v35  ;;  %v144_v50 = vmul.f32 %v564_v20, %v74_v31  ;;  %v347_v30 = vld [vmem:[%s1262_s1 + $0x158] sm:$0xff]  ;;  %v349_v34 = vld [vmem:[%s1262_s1 + $0x168] sm:$0xff] }
  0x3f   :  { %v213_v48 = vadd.f32 %v600_v38, %v143_v36  ;;  %v145_v51 = vmul.f32 %v564_v20, %v75_v32  ;;  %v272_v52 = vmax.f32 %v208_v37, 0.0  ;;  %v273_v53 = vmax.f32 %v209_v40, 0.0  ;;  %v348_v32 = vld [vmem:[%s1262_s1 + $0x160] sm:$0xff] }
  0x40   :  { %v274_v54 = vmax.f32 %v210_v42, 0.0  ;;  %v275_v55 = vmax.f32 %v211_v44, 0.0  ;;  %v276_v58 = vmax.f32 %v212_v46, 0.0  ;;  %v214_v60 = vadd.f32 %v600_v38, %v144_v50  ;;  %v350_v42 = vld [vmem:[%s1262_s1 + $0x170] sm:$0xff]  ;;  %v87_v50 = vld [vmem:[%s1260_s0 + $0x198] sm:$0xff] }
  0x41   :  { %v277_v59 = vmax.f32 %v213_v48, 0.0  ;;  %v215_v61 = vadd.f32 %v600_v38, %v145_v51  ;;  %v400_v1 = vadd.f32 %v336_v39, %v272_v52  ;;  %v401_v2 = vadd.f32 %v337_v41, %v273_v53  ;;  %v85_v48 = vld [vmem:[%s1260_s0 + $0x188] sm:$0xff] }
  0x42   :  { %v402_v3 = vadd.f32 %v338_v43, %v274_v54  ;;  %v403_v4 = vadd.f32 %v339_v45, %v275_v55  ;;  %v404_v8 = vadd.f32 %v340_v47, %v276_v58  ;;  %v278_v10 = vmax.f32 %v214_v60, 0.0  ;;  %v84_v43 = vld [vmem:[%s1260_s0 + $0x180] sm:$0xff]  ;;  %v351_v55 = vld [vmem:[%s1262_s1 + $0x178] sm:$0xff] }
  0x43   :  { %v405_v9 = vadd.f32 %v341_v49, %v277_v59  ;;  %v279_v11 = vmax.f32 %v215_v61, 0.0  ;;  %464 = vst [vmem:[%s1263_s6 + $0x100] sm:$0xff] %v400_v1  ;;  %465 = vst [vmem:[%s1263_s6 + $0x108] sm:$0xff] %v401_v2  ;;  %v146_v12 = vmul.f32 %v564_v20, %v76_v57  ;;  %v147_v13 = vmul.f32 %v564_v20, %v77_v62  ;;  %v86_v49 = vld [vmem:[%s1260_s0 + $0x190] sm:$0xff]  ;;  %v89_v57 = vld [vmem:[%s1260_s0 + $0x1a8] sm:$0xff] }
  0x44   :  { %466 = vst [vmem:[%s1263_s6 + $0x110] sm:$0xff] %v402_v3  ;;  %467 = vst [vmem:[%s1263_s6 + $0x118] sm:$0xff] %v403_v4  ;;  %v148_v14 = vmul.f32 %v564_v20, %v78_v63  ;;  %v149_v15 = vmul.f32 %v564_v20, %v79_v0  ;;  %v406_v18 = vadd.f32 %v342_v56, %v278_v10  ;;  %v88_v56 = vld [vmem:[%s1260_s0 + $0x1a0] sm:$0xff]  ;;  %v90_v2 = vld [vmem:[%s1260_s0 + $0x1b0] sm:$0xff] }
  0x45   :  { %468 = vst [vmem:[%s1263_s6 + $0x120] sm:$0xff] %v404_v8  ;;  %469 = vst [vmem:[%s1263_s6 + $0x128] sm:$0xff] %v405_v9  ;;  %v407_v19 = vadd.f32 %v343_v5, %v279_v11  ;;  %v150_v21 = vmul.f32 %v564_v20, %v80_v6  ;;  %v151_v22 = vmul.f32 %v564_v20, %v81_v7  ;;  %v91_v3 = vld [vmem:[%s1260_s0 + $0x1b8] sm:$0xff]  ;;  %v352_v9 = vld [vmem:[%s1262_s1 + $0x180] sm:$0xff] }
  0x46   :  { %v216_v23 = vadd.f32 %v600_v38, %v146_v12  ;;  %v217_v25 = vadd.f32 %v600_v38, %v147_v13  ;;  %v218_v27 = vadd.f32 %v600_v38, %v148_v14  ;;  %v219_v29 = vadd.f32 %v600_v38, %v149_v15  ;;  %470 = vst [vmem:[%s1263_s6 + $0x130] sm:$0xff] %v406_v18  ;;  %v353_v11 = vld [vmem:[%s1262_s1 + $0x188] sm:$0xff]  ;;  %v354_v13 = vld [vmem:[%s1262_s1 + $0x190] sm:$0xff]  ;;  %v355_v15 = vld [vmem:[%s1262_s1 + $0x198] sm:$0xff] }
  0x47   :  { %471 = vst [vmem:[%s1263_s6 + $0x138] sm:$0xff] %v407_v19  ;;  %v220_v31 = vadd.f32 %v600_v38, %v150_v21  ;;  %v221_v33 = vadd.f32 %v600_v38, %v151_v22  ;;  %v152_v35 = vmul.f32 %v564_v20, %v82_v16  ;;  %v153_v36 = vmul.f32 %v564_v20, %v83_v17  ;;  %v356_v17 = vld [vmem:[%s1262_s1 + $0x1a0] sm:$0xff]  ;;  %v357_v19 = vld [vmem:[%s1262_s1 + $0x1a8] sm:$0xff] }
  0x48   :  { %v280_v37 = vmax.f32 %v216_v23, 0.0  ;;  %v281_v39 = vmax.f32 %v217_v25, 0.0  ;;  %v282_v40 = vmax.f32 %v218_v27, 0.0  ;;  %v283_v41 = vmax.f32 %v219_v29, 0.0  ;;  %v358_v27 = vld [vmem:[%s1262_s1 + $0x1b0] sm:$0xff] }
  0x49   :  { %v284_v44 = vmax.f32 %v220_v31, 0.0  ;;  %v285_v45 = vmax.f32 %v221_v33, 0.0  ;;  %v222_v46 = vadd.f32 %v600_v38, %v152_v35  ;;  %v223_v47 = vadd.f32 %v600_v38, %v153_v36  ;;  %v93_v33 = vld [vmem:[%s1260_s0 + $0x1c8] sm:$0xff]  ;;  %v95_v35 = vld [vmem:[%s1260_s0 + $0x1d8] sm:$0xff] }
  0x4a   :  { %v408_v51 = vadd.f32 %v344_v24, %v280_v37  ;;  %v409_v52 = vadd.f32 %v345_v26, %v281_v39  ;;  %v410_v53 = vadd.f32 %v346_v28, %v282_v40  ;;  %v411_v54 = vadd.f32 %v347_v30, %v283_v41  ;;  %v92_v28 = vld [vmem:[%s1260_s0 + $0x1c0] sm:$0xff]  ;;  %v359_v41 = vld [vmem:[%s1262_s1 + $0x1b8] sm:$0xff] }
  0x4b   :  { %v412_v58 = vadd.f32 %v348_v32, %v284_v44  ;;  %v413_v59 = vadd.f32 %v349_v34, %v285_v45  ;;  %v286_v60 = vmax.f32 %v222_v46, 0.0  ;;  %v287_v61 = vmax.f32 %v223_v47, 0.0  ;;  %v94_v34 = vld [vmem:[%s1260_s0 + $0x1d0] sm:$0xff] }
  0x4c   :  { %472 = vst [vmem:[%s1263_s6 + $0x140] sm:$0xff] %v408_v51  ;;  %473 = vst [vmem:[%s1263_s6 + $0x148] sm:$0xff] %v409_v52  ;;  %v154_v62 = vmul.f32 %v564_v20, %v84_v43  ;;  %v155_v63 = vmul.f32 %v564_v20, %v85_v48  ;;  %v156_v0 = vmul.f32 %v564_v20, %v86_v49  ;;  %v97_v43 = vld [vmem:[%s1260_s0 + $0x1e8] sm:$0xff]  ;;  %v98_v52 = vld [vmem:[%s1260_s0 + $0x1f0] sm:$0xff] }
  0x4d   :  { %474 = vst [vmem:[%s1263_s6 + $0x150] sm:$0xff] %v410_v53  ;;  %475 = vst [vmem:[%s1263_s6 + $0x158] sm:$0xff] %v411_v54  ;;  %v157_v1 = vmul.f32 %v564_v20, %v87_v50  ;;  %v414_v4 = vadd.f32 %v350_v42, %v286_v60  ;;  %v415_v5 = vadd.f32 %v351_v55, %v287_v61  ;;  %v96_v42 = vld [vmem:[%s1260_s0 + $0x1e0] sm:$0xff]  ;;  %v99_v53 = vld [vmem:[%s1260_s0 + $0x1f8] sm:$0xff] }
  0x4e   :  { %476 = vst [vmem:[%s1263_s6 + $0x160] sm:$0xff] %v412_v58  ;;  %477 = vst [vmem:[%s1263_s6 + $0x168] sm:$0xff] %v413_v59  ;;  %v158_v6 = vmul.f32 %v564_v20, %v88_v56  ;;  %v159_v7 = vmul.f32 %v564_v20, %v89_v57  ;;  %v224_v8 = vadd.f32 %v600_v38, %v154_v62  ;;  %v360_v59 = vld [vmem:[%s1262_s1 + $0x1c0] sm:$0xff] }
  0x4f   :  { %v225_v10 = vadd.f32 %v600_v38, %v155_v63  ;;  %v226_v12 = vadd.f32 %v600_v38, %v156_v0  ;;  %v227_v14 = vadd.f32 %v600_v38, %v157_v1  ;;  %478 = vst [vmem:[%s1263_s6 + $0x170] sm:$0xff] %v414_v4  ;;  %479 = vst [vmem:[%s1263_s6 + $0x178] sm:$0xff] %v415_v5  ;;  %v361_v63 = vld [vmem:[%s1262_s1 + $0x1c8] sm:$0xff]  ;;  %v362_v0 = vld [vmem:[%s1262_s1 + $0x1d0] sm:$0xff] }
  0x50   :  { %v228_v16 = vadd.f32 %v600_v38, %v158_v6  ;;  %v229_v18 = vadd.f32 %v600_v38, %v159_v7  ;;  %v160_v21 = vmul.f32 %v564_v20, %v90_v2  ;;  %v161_v22 = vmul.f32 %v564_v20, %v91_v3  ;;  %v363_v1 = vld [vmem:[%s1262_s1 + $0x1d8] sm:$0xff] }
  0x51   :  { %v288_v23 = vmax.f32 %v224_v8, 0.0  ;;  %v289_v24 = vmax.f32 %v225_v10, 0.0  ;;  %v290_v25 = vmax.f32 %v226_v12, 0.0  ;;  %v291_v26 = vmax.f32 %v227_v14, 0.0  ;;  %v364_v10 = vld [vmem:[%s1262_s1 + $0x1e0] sm:$0xff] }
  0x52   :  { %v292_v29 = vmax.f32 %v228_v16, 0.0  ;;  %v293_v30 = vmax.f32 %v229_v18, 0.0  ;;  %v230_v31 = vadd.f32 %v600_v38, %v160_v21  ;;  %v231_v32 = vadd.f32 %v600_v38, %v161_v22  ;;  %v367_v21 = vld [vmem:[%s1262_s1 + $0x1f8] sm:$0xff] }
  0x53   :  { %v416_v36 = vadd.f32 %v352_v9, %v288_v23  ;;  %v417_v37 = vadd.f32 %v353_v11, %v289_v24  ;;  %v418_v39 = vadd.f32 %v354_v13, %v290_v25  ;;  %v419_v40 = vadd.f32 %v355_v15, %v291_v26  ;;  %v365_v11 = vld [vmem:[%s1262_s1 + $0x1e8] sm:$0xff] }
  0x54   :  { %v420_v44 = vadd.f32 %v356_v17, %v292_v29  ;;  %v421_v45 = vadd.f32 %v357_v19, %v293_v30  ;;  %v294_v46 = vmax.f32 %v230_v31, 0.0  ;;  %v295_v47 = vmax.f32 %v231_v32, 0.0  ;;  %v366_v19 = vld [vmem:[%s1262_s1 + $0x1f0] sm:$0xff] }
  0x55   :  { %480 = vst [vmem:[%s1263_s6 + $0x180] sm:$0xff] %v416_v36  ;;  %481 = vst [vmem:[%s1263_s6 + $0x188] sm:$0xff] %v417_v37  ;;  %v162_v48 = vmul.f32 %v564_v20, %v92_v28  ;;  %v163_v49 = vmul.f32 %v564_v20, %v93_v33  ;;  %v164_v50 = vmul.f32 %v564_v20, %v94_v34 }
  0x56   :  { %482 = vst [vmem:[%s1263_s6 + $0x190] sm:$0xff] %v418_v39  ;;  %483 = vst [vmem:[%s1263_s6 + $0x198] sm:$0xff] %v419_v40  ;;  %v165_v51 = vmul.f32 %v564_v20, %v95_v35  ;;  %v422_v54 = vadd.f32 %v358_v27, %v294_v46  ;;  %v423_v55 = vadd.f32 %v359_v41, %v295_v47 }
  0x57   :  { %484 = vst [vmem:[%s1263_s6 + $0x1a0] sm:$0xff] %v420_v44  ;;  %485 = vst [vmem:[%s1263_s6 + $0x1a8] sm:$0xff] %v421_v45  ;;  %v166_v56 = vmul.f32 %v564_v20, %v96_v42  ;;  %v167_v57 = vmul.f32 %v564_v20, %v97_v43  ;;  %v232_v58 = vadd.f32 %v600_v38, %v162_v48 }
  0x58   :  { %v233_v60 = vadd.f32 %v600_v38, %v163_v49  ;;  %v234_v61 = vadd.f32 %v600_v38, %v164_v50  ;;  %v235_v62 = vadd.f32 %v600_v38, %v165_v51  ;;  %486 = vst [vmem:[%s1263_s6 + $0x1b0] sm:$0xff] %v422_v54  ;;  %487 = vst [vmem:[%s1263_s6 + $0x1b8] sm:$0xff] %v423_v55 }
  0x59   :  { %v236_v2 = vadd.f32 %v600_v38, %v166_v56  ;;  %v237_v3 = vadd.f32 %v600_v38, %v167_v57  ;;  %v168_v4 = vmul.f32 %v564_v20, %v98_v52  ;;  %v169_v5 = vmul.f32 %v564_v20, %v99_v53 }
  0x5a   :  { %v296_v6 = vmax.f32 %v232_v58, 0.0  ;;  %v297_v7 = vmax.f32 %v233_v60, 0.0  ;;  %v298_v8 = vmax.f32 %v234_v61, 0.0  ;;  %v299_v9 = vmax.f32 %v235_v62, 0.0 }
  0x5b   :  { %v300_v12 = vmax.f32 %v236_v2, 0.0  ;;  %v301_v13 = vmax.f32 %v237_v3, 0.0  ;;  %v238_v14 = vadd.f32 %v600_v38, %v168_v4  ;;  %v239_v15 = vadd.f32 %v600_v38, %v169_v5 }
  0x5c   :  { %v424_v16 = vadd.f32 %v360_v59, %v296_v6  ;;  %v425_v20 = vadd.f32 %v361_v63, %v297_v7  ;;  %v426_v17 = vadd.f32 %v362_v0, %v298_v8  ;;  %v427_v18 = vadd.f32 %v363_v1, %v299_v9 }
  0x5d   :  { %v428_v22 = vadd.f32 %v364_v10, %v300_v12  ;;  %v429_v23 = vadd.f32 %v365_v11, %v301_v13  ;;  %v302_v24 = vmax.f32 %v238_v14, 0.0  ;;  %v303_v25 = vmax.f32 %v239_v15, 0.0 }
  0x5e   :  { %488 = vst [vmem:[%s1263_s6 + $0x1c0] sm:$0xff] %v424_v16  ;;  %489 = vst [vmem:[%s1263_s6 + $0x1c8] sm:$0xff] %v425_v20 }
  0x5f   :  { %490 = vst [vmem:[%s1263_s6 + $0x1d0] sm:$0xff] %v426_v17  ;;  %491 = vst [vmem:[%s1263_s6 + $0x1d8] sm:$0xff] %v427_v18  ;;  %v430_v38 = vadd.f32 %v366_v19, %v302_v24  ;;  %v431_v26 = vadd.f32 %v367_v21, %v303_v25 }
  0x60   :  { %492 = vst [vmem:[%s1263_s6 + $0x1e0] sm:$0xff] %v428_v22  ;;  %493 = vst [vmem:[%s1263_s6 + $0x1e8] sm:$0xff] %v429_v23 }
  0x61   :  { %494 = vst [vmem:[%s1263_s6 + $0x1f0] sm:$0xff] %v430_v38  ;;  %495 = vst [vmem:[%s1263_s6 + $0x1f8] sm:$0xff] %v431_v26 }

// kernel: residual_block.2
= control target key start
LH: loop header
LB: loop body
LE: loop exit
PB: predicated region body
PF: predicated region fallthrough
CT: control target
= control target key end

     0   :  { %s5262_s18 = smov 0   ;;  %s6589_s0 = inlined_call_operand.vmem [shape: f32[2,18,18,128], index: 0, kind: input, shape index: {}]   ;;  %s6590_s1 = inlined_call_operand.vmem [shape: f32[9,128,128], index: 1, kind: input, shape index: {}]   ;;  %s6591_s2 = inlined_call_operand.vmem [shape: f32[1,128], index: 2, kind: input, shape index: {}]   ;;  %s6592_s3 = inlined_call_operand.vmem [shape: f32[512,128], index: 3, kind: output, shape index: {0}]   ;;  %s6593_s4 = inlined_call_operand.vmem [shape: f32[1,128], index: 4, kind: output, shape index: {1}]   ;;  %s6594_s5 = inlined_call_operand.vmem [shape: f32[1,128], index: 5, kind: output, shape index: {2}]  }
   0x1 LB: > { %s5268_s19 = sadd.s32 4294967295, %s5229_s18   ;;  %p3173_p0 = scmp.ge.s32.totalorder %s5229_s18, 1  ;;  %s5229_s18 = sphi %s5262_s18, %s16_s18  }
   0x2   : > { %p182_p1 = scmp.lt.s32.totalorder %s5229_s18, 3 }
   0x4   : > { %p183_p2 = pnand %p3173_p0, %p182_p1 }
   0x6   : > { %186 = sbr.rel (%p183_p2) target bundleno = 630 (0x276), region = 32 }
   0xd   : > { %v3177_v0 = vld [vmem:[%s6590_s1 + $0x80] sm:$0xff]  ;;  %v3178_v1 = vld [vmem:[%s6590_s1 + $0x88] sm:$0xff]  ;;  %p210_p3 = scmp.lt.s32.totalorder %s5268_s19, 1  ;;  %v3179_v5 = vld [vmem:[%s6590_s1 + $0x90] sm:$0xff]  ;;  %s3175_s25 = sshll.u32 %s5268_s19, 5 }
   0xe   : > { %v3289_v2 = vld [vmem:[%s6590_s1 + $0x200] sm:$0xff]  ;;  %v4653_v3 = vpack.c.bf16 %v3178_v1, %v3177_v0  ;;  %v3290_v4 = vld [vmem:[%s6590_s1 + $0x208] sm:$0xff]  ;;  %v3180_v6 = vld [vmem:[%s6590_s1 + $0x98] sm:$0xff]  ;;  %p216_p4 = scmp.lt.s32.totalorder %s3175_s25, 63  ;;  %p3498_p5 = scmp.ne.s32.totalorder %s5268_s19, 0 }
   0xf   : > { %v5291_v7 = vpack.c.bf16 %v3290_v4, %v3289_v2  ;;  %v4657_v8 = vpack.c.bf16 %v3180_v6, %v3179_v5  ;;  %v3291_v9 = vld [vmem:[%s6590_s1 + $0x210] sm:$0xff]  ;;  %v3292_v10 = vld [vmem:[%s6590_s1 + $0x218] sm:$0xff]  ;;  %v3181_v11 = vld [vmem:[%s6590_s1 + $0xa0] sm:$0xff]  ;;  %s211_s13 = scalar_select %p210_p3, %s5268_s19, 1 }
  0x10   : > { %4654 = vmatprep.subr.bf16.mxu1 %v4653_v3  ;;  %v5303_v12 = vpack.c.bf16 %v3292_v10, %v3291_v9  ;;  %v3182_v13 = vld [vmem:[%s6590_s1 + $0xa8] sm:$0xff]  ;;  %v3293_v14 = vld [vmem:[%s6590_s1 + $0x220] sm:$0xff]  ;;  %v3183_v18 = vld [vmem:[%s6590_s1 + $0xb0] sm:$0xff]  ;;  %s6696_s25 = smov (!%p216_p4, %s3175_s25), 63 }
  0x11   : > { %v3294_v15 = vld [vmem:[%s6590_s1 + $0x228] sm:$0xff]  ;;  %4782 = vmatprep.subr.bf16.mxu0 %v5291_v7  ;;  %4656 = vmatpush3.bf16.msra.mxu1 %v4653_v3  ;;  %s5213_s22 = smul.u32 432, %s211_s13  ;;  %v4661_v16 = vpack.c.bf16 %v3182_v13, %v3181_v11  ;;  %v3184_v19 = vld [vmem:[%s6590_s1 + $0xb8] sm:$0xff]  ;;  %v3295_v20 = vld [vmem:[%s6590_s1 + $0x230] sm:$0xff] }
  0x12   : > { %6633 = vst [vmem:[#allocation2_spill] sm:$0xff] %v5303_v12  ;;  %4784 = vmatpush3.bf16.msra.mxu0 %v5291_v7  ;;  %4658 = vmatprep.subr.bf16.mxu1 %v4657_v8  ;;  %v5317_v17 = vpack.c.bf16 %v3294_v15, %v3293_v14  ;;  %v3296_v21 = vld [vmem:[%s6590_s1 + $0x238] sm:$0xff]  ;;  %v4665_v22 = vpack.c.bf16 %v3184_v19, %v3183_v18  ;;  %v3185_v24 = vld [vmem:[%s6590_s1 + $0xc0] sm:$0xff]  ;;  %v3186_v25 = vld [vmem:[%s6590_s1 + $0xc8] sm:$0xff] }
  0x13   : > { %4786 = vmatprep.subr.bf16.mxu0 %v5303_v12  ;;  %s5334_s8 = scalar_lea.vmem %s6589_s0, %s5213_s22  ;;  %v5338_v23 = vpack.c.bf16 %v3296_v21, %v3295_v20  ;;  %v3297_v27 = vld [vmem:[%s6590_s1 + $0x240] sm:$0xff]  ;;  %v3298_v28 = vld [vmem:[%s6590_s1 + $0x248] sm:$0xff]  ;;  %v4669_v30 = vpack.c.bf16 %v3186_v25, %v3185_v24  ;;  %v3187_v32 = vld [vmem:[%s6590_s1 + $0xd0] sm:$0xff] }
  0x14   : > { %6634 = vst [vmem:[#allocation3_spill] sm:$0xff] %v5317_v17  ;;  %v269_v26 = vld [vmem:[%s5334_s8 + $0x1] sm:$0xff]  ;;  %v5354_v29 = vld [vmem:[%s5334_s8 + $0x19] sm:$0xff]  ;;  %v5359_v31 = vpack.c.bf16 %v3298_v28, %v3297_v27  ;;  %v3299_v34 = vld [vmem:[%s6590_s1 + $0x250] sm:$0xff] }
  0x15   : > { %4660 = vmatpush3.bf16.msra.mxu1 %v4657_v8  ;;  %6635 = vst [vmem:[#allocation4_spill] sm:$0xff] %v5338_v23  ;;  %3965 = vmatprep.mubr.f32.mxu1 %v269_v26  ;;  %v3188_v33 = vld [vmem:[%s6590_s1 + $0xd8] sm:$0xff]  ;;  %v3189_v38 = vld [vmem:[%s6590_s1 + $0xe0] sm:$0xff]  ;;  %v3190_v39 = vld [vmem:[%s6590_s1 + $0xe8] sm:$0xff] }
  0x16   : > { %4788 = vmatpush3.bf16.msra.mxu0 %v5303_v12  ;;  %4662 = vmatprep.subr.bf16.mxu1 %v4661_v16  ;;  %6636 = vst [vmem:[#allocation5_spill] sm:$0xff] %v5359_v31  ;;  %v3300_v35 = vld [vmem:[%s6590_s1 + $0x258] sm:$0xff]  ;;  %v4673_v36 = vpack.c.bf16 %v3188_v33, %v3187_v32  ;;  %v3301_v40 = vld [vmem:[%s6590_s1 + $0x260] sm:$0xff]  ;;  %v3302_v41 = vld [vmem:[%s6590_s1 + $0x268] sm:$0xff]  ;;  %v4677_v42 = vpack.c.bf16 %v3190_v39, %v3189_v38 }
  0x17   : > { %4790 = vmatprep.subr.bf16.mxu0 %v5317_v17  ;;  %4285 = vmatprep.mubr.f32.mxu0 %v5354_v29  ;;  %v5375_v37 = vpack.c.bf16 %v3300_v35, %v3299_v34  ;;  %v5391_v43 = vpack.c.bf16 %v3302_v41, %v3301_v40  ;;  %v3191_v44 = vld [vmem:[%s6590_s1 + $0xf0] sm:$0xff]  ;;  %v3192_v45 = vld [vmem:[%s6590_s1 + $0xf8] sm:$0xff]  ;;  %v253_v50 = vld [vmem:[%s6590_s1] sm:$0xff] }
  0x18   : > { %v3303_v46 = vld [vmem:[%s6590_s1 + $0x270] sm:$0xff]  ;;  %v3304_v47 = vld [vmem:[%s6590_s1 + $0x278] sm:$0xff]  ;;  %v4681_v48 = vpack.c.bf16 %v3192_v45, %v3191_v44  ;;  %v254_v51 = vld [vmem:[%s6590_s1 + $0x8] sm:$0xff] }
  0x19   : > { %4664 = vmatpush3.bf16.msra.mxu1 %v4661_v16  ;;  %6637 = vst [vmem:[#allocation6_spill] sm:$0xff] %v5375_v37  ;;  %6638 = vst [vmem:[#allocation7_spill] sm:$0xff] %v5391_v43  ;;  %v5407_v49 = vpack.c.bf16 %v3304_v47, %v3303_v46  ;;  %v3337_v52 = vld [vmem:[%s6590_s1 + $0x280] sm:$0xff]  ;;  %v3338_v53 = vld [vmem:[%s6590_s1 + $0x288] sm:$0xff]  ;;  %v4685_v54 = vpack.c.bf16 %v254_v51, %v253_v50 }
  0x1a   : > { %4792 = vmatpush3.bf16.msra.mxu0 %v5317_v17  ;;  %4666 = vmatprep.subr.bf16.mxu1 %v4665_v22  ;;  %v4813_v55 = vpack.c.bf16 %v3338_v53, %v3337_v52  ;;  %v3339_v56 = vld [vmem:[%s6590_s1 + $0x290] sm:$0xff]  ;;  %v3340_v57 = vld [vmem:[%s6590_s1 + $0x298] sm:$0xff]  ;;  %v3258_v61 = vld [vmem:[%s5334_s8 + $0x21] sm:$0xff] }
  0x1b   : > { %4794 = vmatprep.subr.bf16.mxu0 %v5338_v23  ;;  %6639 = vst [vmem:[#allocation8_spill] sm:$0xff] %v5407_v49  ;;  %v270_v58 = vld [vmem:[%s5334_s8 + $0x9] sm:$0xff]  ;;  %v256_v60 = vld [vmem:[%s6590_s1 + $0x18] sm:$0xff]  ;;  %v4817_v62 = vpack.c.bf16 %v3340_v57, %v3339_v56  ;;  %v3341_v1 = vld [vmem:[%s6590_s1 + $0x2a0] sm:$0xff] }
  0x1c   : > { %v255_v59 = vld [vmem:[%s6590_s1 + $0x10] sm:$0xff]  ;;  %v3342_v2 = vld [vmem:[%s6590_s1 + $0x2a8] sm:$0xff]  ;;  %v257_v3 = vld [vmem:[%s6590_s1 + $0x20] sm:$0xff] }
  0x1d   : > { %4668 = vmatpush3.bf16.msra.mxu1 %v4665_v22  ;;  %v3259_v63 = vld [vmem:[%s5334_s8 + $0x31] sm:$0xff]  ;;  %v4689_v0 = vpack.c.bf16 %v256_v60, %v255_v59  ;;  %v258_v4 = vld [vmem:[%s6590_s1 + $0x28] sm:$0xff]  ;;  %v3260_v5 = vld [vmem:[%s5334_s8 + $0x39] sm:$0xff]  ;;  %v4821_v8 = vpack.c.bf16 %v3342_v2, %v3341_v1 }
  0x1e   : > { %4796 = vmatpush3.bf16.msra.mxu0 %v5338_v23  ;;  %4670 = vmatprep.subr.bf16.mxu1 %v4669_v30  ;;  %v3261_v6 = vld [vmem:[%s5334_s8 + $0x49] sm:$0xff]  ;;  %v3344_v10 = vld [vmem:[%s6590_s1 + $0x2b8] sm:$0xff]  ;;  %v4693_v11 = vpack.c.bf16 %v258_v4, %v257_v3  ;;  %v3263_v16 = vld [vmem:[%s5334_s8 + $0x61] sm:$0xff] }
  0x1f   : > { %4798 = vmatprep.subr.bf16.mxu0 %v5359_v31  ;;  %v3343_v9 = vld [vmem:[%s6590_s1 + $0x2b0] sm:$0xff]  ;;  %v260_v14 = vld [vmem:[%s6590_s1 + $0x38] sm:$0xff]  ;;  %v3345_v19 = vld [vmem:[%s6590_s1 + $0x2c0] sm:$0xff] }
  0x20   : > { %v259_v13 = vld [vmem:[%s6590_s1 + $0x30] sm:$0xff]  ;;  %v4825_v18 = vpack.c.bf16 %v3344_v10, %v3343_v9  ;;  %v3346_v20 = vld [vmem:[%s6590_s1 + $0x2c8] sm:$0xff]  ;;  %v261_v22 = vld [vmem:[%s6590_s1 + $0x40] sm:$0xff] }
  0x21   : > { %4672 = vmatpush3.bf16.msra.mxu1 %v4669_v30  ;;  %v3262_v15 = vld [vmem:[%s5334_s8 + $0x51] sm:$0xff]  ;;  %v4697_v21 = vpack.c.bf16 %v260_v14, %v259_v13  ;;  %v262_v24 = vld [vmem:[%s6590_s1 + $0x48] sm:$0xff]  ;;  %v3265_v26 = vld [vmem:[%s5334_s8 + $0x79] sm:$0xff]  ;;  %v4829_v27 = vpack.c.bf16 %v3346_v20, %v3345_v19 }
  0x22   : > { %4800 = vmatpush3.bf16.msra.mxu0 %v5359_v31  ;;  %4674 = vmatprep.subr.bf16.mxu1 %v4673_v36  ;;  %v3264_v25 = vld [vmem:[%s5334_s8 + $0x69] sm:$0xff]  ;;  %v4701_v30 = vpack.c.bf16 %v262_v24, %v261_v22  ;;  %v264_v33 = vld [vmem:[%s6590_s1 + $0x58] sm:$0xff]  ;;  %v3266_v34 = vld [vmem:[%s5334_s8 + $0x81] sm:$0xff] }
  0x23   : > { %4802 = vmatprep.subr.bf16.mxu0 %v5375_v37  ;;  %v3347_v28 = vld [vmem:[%s6590_s1 + $0x2d0] sm:$0xff]  ;;  %v3349_v38 = vld [vmem:[%s6590_s1 + $0x2e0] sm:$0xff]  ;;  %v3350_v39 = vld [vmem:[%s6590_s1 + $0x2e8] sm:$0xff] }
  0x24   : > { %v263_v32 = vld [vmem:[%s6590_s1 + $0x50] sm:$0xff]  ;;  %v265_v41 = vld [vmem:[%s6590_s1 + $0x60] sm:$0xff]  ;;  %v4837_v46 = vpack.c.bf16 %v3350_v39, %v3349_v38  ;;  %v268_v52 = vld [vmem:[%s6590_s1 + $0x78] sm:$0xff] }
  0x25   : > { %4676 = vmatpush3.bf16.msra.mxu1 %v4673_v36  ;;  %v5496_v35 = vld [vmem:[%s5334_s8 + $0x91] sm:$0xff]  ;;  %v4705_v40 = vpack.c.bf16 %v264_v33, %v263_v32  ;;  %v3268_v44 = vld [vmem:[%s5334_s8 + $0x99] sm:$0xff]  ;;  %v3269_v45 = vld [vmem:[%s5334_s8 + $0xa9] sm:$0xff] }
  0x26   : > { %4804 = vmatpush3.bf16.msra.mxu0 %v5375_v37  ;;  %4678 = vmatprep.subr.bf16.mxu1 %v4677_v42  ;;  %v3351_v47 = vld [vmem:[%s6590_s1 + $0x2f0] sm:$0xff]  ;;  %v3385_v56 = vld [vmem:[%s6590_s1 + $0x300] sm:$0xff]  ;;  %v3386_v57 = vld [vmem:[%s6590_s1 + $0x308] sm:$0xff] }
  0x27   : > { %4806 = vmatprep.subr.bf16.mxu0 %v5391_v43  ;;  %v267_v51 = vld [vmem:[%s6590_s1 + $0x70] sm:$0xff]  ;;  %v3193_v59 = vld [vmem:[%s6590_s1 + $0x100] sm:$0xff]  ;;  %v3194_v60 = vld [vmem:[%s6590_s1 + $0x108] sm:$0xff] }
  0x28   : > { %v3270_v53 = vld [vmem:[%s5334_s8 + $0xb1] sm:$0xff]  ;;  %v5555_v2 = vpack.c.bf16 %v3194_v60, %v3193_v59  ;;  %v5561_v3 = vld [vmem:[%s5334_s8 + $0x22] sm:$0xff]  ;;  %v5564_v4 = vld [vmem:[%s5334_s8 + $0xd9] sm:$0xff] }
  0x29   : > { %4680 = vmatpush3.bf16.msra.mxu1 %v4677_v42  ;;  %v266_v42 = vld [vmem:[%s6590_s1 + $0x68] sm:$0xff]  ;;  %v3388_v1 = vld [vmem:[%s6590_s1 + $0x318] sm:$0xff]  ;;  %v3395_v33 = vld [vmem:[%s6590_s1 + $0x350] sm:$0xff] }
  0x2a   : > { %4808 = vmatpush3.bf16.msra.mxu0 %v5391_v43  ;;  %4682 = vmatprep.subr.bf16.mxu1 %v4681_v48  ;;  %v4709_v50 = vpack.c.bf16 %v266_v42, %v265_v41  ;;  %v3390_v9 = vld [vmem:[%s6590_s1 + $0x328] sm:$0xff]  ;;  %v5587_v13 = vld [vmem:[%s5334_s8 + $0xf1] sm:$0xff]  ;;  %v5602_v19 = vld [vmem:[%s5334_s8 + $0xf9] sm:$0xff] }
  0x2b   : > { %4810 = vmatprep.subr.bf16.mxu0 %v5407_v49  ;;  %v5580_v10 = vld [vmem:[%s5334_s8 + $0xe1] sm:$0xff]  ;;  %v5590_v14 = vld [vmem:[%s5334_s8 + $0x4a] sm:$0xff]  ;;  %v5606_v20 = vld [vmem:[%s5334_s8 + $0x52] sm:$0xff] }
  0x2c   : > { %v5612_v22 = vld [vmem:[%s5334_s8 + $0x62] sm:$0xff]  ;;  %v5653_v39 = vld [vmem:[%s5334_s8 + $0x139] sm:$0xff] }
  0x2d   : > { %4684 = vmatpush3.bf16.msra.mxu1 %v4681_v48  ;;  %v3352_v48 = vld [vmem:[%s6590_s1 + $0x2f8] sm:$0xff]  ;;  %v5650_v38 = vld [vmem:[%s5334_s8 + $0x82] sm:$0xff]  ;;  %6644 = vst [vmem:[#allocation13_spill] sm:$0xff] %v5653_v39 }
  0x2e   : > { %4812 = vmatpush3.bf16.msra.mxu0 %v5407_v49  ;;  %4686 = vmatprep.subr.bf16.mxu1 %v4685_v54  ;;  %v3397_v42 = vld [vmem:[%s6590_s1 + $0x360] sm:$0xff]  ;;  %v3434_v60 = vld [vmem:[%s6590_s1 + $0x388] sm:$0xff]  ;;  %v3204_v49 = vld [vmem:[%s6590_s1 + $0x158] sm:$0xff] }
  0x2f   : > { %4814 = vmatprep.subr.bf16.mxu0 %v4813_v55  ;;  %v3433_v59 = vld [vmem:[%s6590_s1 + $0x380] sm:$0xff]  ;;  %v5830_v43 = vld [vmem:[%s5334_s8 + $0x152] sm:$0xff]  ;;  %v3242_v17 = vld [vmem:[%s6590_s1 + $0x188] sm:$0xff] }
  0x30   : > { %3966 = vmatmul.mubr.f32.vlgmr.msra.gmra.mrb[0].mxu1 %v270_v58  ;;  %v4713_v58 = vpack.c.bf16 %v268_v52, %v267_v51  ;;  %v3399_v51 = vld [vmem:[%s6590_s1 + $0x370] sm:$0xff]  ;;  %v3400_v52 = vld [vmem:[%s6590_s1 + $0x378] sm:$0xff]  ;;  %v3205_v37 = vld [vmem:[%s6590_s1 + $0x160] sm:$0xff] }
  0x31   : > { %4286 = vmatmul.mubr.f32.vlgmr.msra.gmra.mrb[0].mxu0 %v3258_v61  ;;  %4688 = vmatpush3.bf16.msra.mxu1 %v4685_v54  ;;  %v5528_v54 = vld [vmem:[%s5334_s8 + $0xc1] sm:$0xff]  ;;  %v3436_v12 = vld [vmem:[%s6590_s1 + $0x398] sm:$0xff] }
  0x32   : > { %4816 = vmatpush3.bf16.msra.mxu0 %v4813_v55  ;;  %3968 = vmatprep.mubr.f32.mxu1 %v5354_v29  ;;  %v3348_v29 = vld [vmem:[%s6590_s1 + $0x2d8] sm:$0xff]  ;;  %v4841_v55 = vpack.c.bf16 %v3352_v48, %v3351_v47  ;;  %v5678_v48 = vld [vmem:[%s5334_s8 + $0xaa] sm:$0xff]  ;;  %v3335_v23 = vld [vmem:[%s5334_s8 + $0x182] sm:$0xff] }
  0x33   : > { %4288 = vmatprep.mubr.f32.mxu0 %v3259_v63  ;;  %4818 = vmatprep.subr.bf16.mxu0 %v4817_v62  ;;  %v4833_v36 = vpack.c.bf16 %v3348_v29, %v3347_v28  ;;  %v5628_v28 = vld [vmem:[%s5334_s8 + $0x6a] sm:$0xff]  ;;  %v5631_v29 = vld [vmem:[%s5334_s8 + $0x121] sm:$0xff] }
  0x34   : > { %3969 = vmatmul.mubr.f32.gmra.mrb[2].mxu1 %v3258_v61  ;;  %4690 = vmatprep.subr.bf16.mxu1 %v4689_v0  ;;  %v5544_v61 = vld [vmem:[%s5334_s8 + $0xc9] sm:$0xff]  ;;  %6642 = vst [vmem:[#allocation11_spill] sm:$0xff] %v5631_v29  ;;  %v5675_v47 = vld [vmem:[%s5334_s8 + $0x151] sm:$0xff] }
  0x35   : > { %4289 = vmatmul.mubr.f32.gmra.mrb[2].mxu0 %v3260_v5  ;;  %3971 = vmatprep.mubr.f32.mxu1 %v3259_v63  ;;  %v4845_v63 = vpack.c.bf16 %v3386_v57, %v3385_v56  ;;  %6646 = vst [vmem:[#allocation15_spill] sm:$0xff] %v5675_v47  ;;  %v5697_v56 = vld [vmem:[%s5334_s8 + $0x169] sm:$0xff] }
  0x36   : > { %4820 = vmatpush3.bf16.msra.mxu0 %v4817_v62  ;;  %4291 = vmatprep.mubr.f32.mxu0 %v3261_v6  ;;  %v5547_v62 = vld [vmem:[%s5334_s8 + $0x1a] sm:$0xff]  ;;  %6648 = vst [vmem:[#allocation17_spill] sm:$0xff] %v5697_v56  ;;  %v5700_v57 = vld [vmem:[%s5334_s8 + $0xc2] sm:$0xff] }
  0x37   : > { %4822 = vmatprep.subr.bf16.mxu0 %v4821_v8  ;;  %4692 = vmatpush3.bf16.msra.mxu1 %v4689_v0  ;;  %v3387_v0 = vld [vmem:[%s6590_s1 + $0x310] sm:$0xff] }
  0x38   : > { %3972 = vmatmul.mubr.f32.gmra.mrb[4].mxu1 %v3260_v5  ;;  %4694 = vmatprep.subr.bf16.mxu1 %v4693_v11  ;;  %v5567_v5 = vld [vmem:[%s5334_s8 + $0x32] sm:$0xff] }
  0x39   : > { %4292 = vmatmul.mubr.f32.gmra.mrb[4].mxu0 %v3262_v15  ;;  %3974 = vmatprep.mubr.f32.mxu1 %v3261_v6  ;;  %v4849_v6 = vpack.c.bf16 %v3388_v1, %v3387_v0  ;;  %v5716_v0 = vld [vmem:[%s5334_s8 + $0xca] sm:$0xff]  ;;  %v221_v1 = vld [vmem:[%s5334_s8] sm:$0xff] }
  0x3a   : > { %4824 = vmatpush3.bf16.msra.mxu0 %v4821_v8  ;;  %4294 = vmatprep.mubr.f32.mxu0 %v3263_v16  ;;  %v3389_v8 = vld [vmem:[%s6590_s1 + $0x320] sm:$0xff] }
  0x3b   : > { %4826 = vmatprep.subr.bf16.mxu0 %v4825_v18  ;;  %4696 = vmatpush3.bf16.msra.mxu1 %v4693_v11  ;;  %v5584_v11 = vld [vmem:[%s5334_s8 + $0x3a] sm:$0xff] }
  0x3c   : > { %3975 = vmatmul.mubr.f32.gmra.mrb[6].mxu1 %v3262_v15  ;;  %4698 = vmatprep.subr.bf16.mxu1 %v4697_v21  ;;  %v4853_v15 = vpack.c.bf16 %v3390_v9, %v3389_v8  ;;  %v5722_v8 = vpack.c.bf16 %v3434_v60, %v3433_v59  ;;  %v3195_v9 = vld [vmem:[%s6590_s1 + $0x110] sm:$0xff]  ;;  %v5783_v59 = vld [vmem:[%s5334_s8 + $0x48] sm:$0xff] }
  0x3d   : > { %4295 = vmatmul.mubr.f32.gmra.mrb[6].mxu0 %v3264_v25  ;;  %3977 = vmatprep.mubr.f32.mxu1 %v3263_v16  ;;  %v3391_v16 = vld [vmem:[%s6590_s1 + $0x330] sm:$0xff]  ;;  %6652 = vst [vmem:[#allocation21_spill] sm:$0xff] %v5783_v59  ;;  %v5786_v60 = vld [vmem:[%s5334_s8 + $0x122] sm:$0xff] }
  0x3e   : > { %4828 = vmatpush3.bf16.msra.mxu0 %v4825_v18  ;;  %4297 = vmatprep.mubr.f32.mxu0 %v3265_v26  ;;  %v3392_v18 = vld [vmem:[%s6590_s1 + $0x338] sm:$0xff] }
  0x3f   : > { %4830 = vmatprep.subr.bf16.mxu0 %v4829_v27  ;;  %4700 = vmatpush3.bf16.msra.mxu1 %v4697_v21  ;;  %v5609_v21 = vld [vmem:[%s5334_s8 + $0x109] sm:$0xff]  ;;  %v4857_v24 = vpack.c.bf16 %v3392_v18, %v3391_v16 }
  0x40   : > { %3978 = vmatmul.mubr.f32.gmra.mrb[8].mxu1 %v3264_v25  ;;  %4702 = vmatprep.subr.bf16.mxu1 %v4701_v30  ;;  %6640 = vst [vmem:[#allocation9_spill] sm:$0xff] %v5609_v21  ;;  %v3393_v25 = vld [vmem:[%s6590_s1 + $0x340] sm:$0xff]  ;;  %v222_v16 = vld [vmem:[%s5334_s8 + $0x8] sm:$0xff] }
  0x41   : > { %4298 = vmatmul.mubr.f32.gmra.mrb[8].mxu0 %v3266_v34  ;;  %3980 = vmatprep.mubr.f32.mxu1 %v3265_v26  ;;  %v3394_v26 = vld [vmem:[%s6590_s1 + $0x348] sm:$0xff] }
  0x42   : > { %4832 = vmatpush3.bf16.msra.mxu0 %v4829_v27  ;;  %4300 = vmatprep.mubr.f32.mxu0 %v5496_v35  ;;  %v5624_v27 = vld [vmem:[%s5334_s8 + $0x111] sm:$0xff]  ;;  %v4861_v32 = vpack.c.bf16 %v3394_v26, %v3393_v25  ;;  %v5735_v18 = vld [vmem:[%s5334_s8 + $0xe2] sm:$0xff] }
  0x43   : > { %4834 = vmatprep.subr.bf16.mxu0 %v4833_v36  ;;  %4704 = vmatpush3.bf16.msra.mxu1 %v4701_v30  ;;  %6641 = vst [vmem:[#allocation10_spill] sm:$0xff] %v5624_v27  ;;  %v5634_v30 = vld [vmem:[%s5334_s8 + $0x7a] sm:$0xff]  ;;  %v5741_v25 = vld [vmem:[%s5334_s8 + $0xf2] sm:$0xff] }
  0x44   : > { %3981 = vmatmul.mubr.f32.gmra.mrb[10].mxu1 %v3266_v34  ;;  %4706 = vmatprep.subr.bf16.mxu1 %v4705_v40  ;;  %v3396_v34 = vld [vmem:[%s6590_s1 + $0x358] sm:$0xff] }
  0x45   : > { %4301 = vmatmul.mubr.f32.gmra.mrb[10].mxu0 %v3268_v44  ;;  %3983 = vmatprep.mubr.f32.mxu1 %v5496_v35  ;;  %v4865_v41 = vpack.c.bf16 %v3396_v34, %v3395_v33  ;;  %v3198_v33 = vld [vmem:[%s6590_s1 + $0x128] sm:$0xff]  ;;  %v5753_v34 = vld [vmem:[%s5334_s8 + $0x20] sm:$0xff] }
  0x46   : > { %4836 = vmatpush3.bf16.msra.mxu0 %v4833_v36  ;;  %4303 = vmatprep.mubr.f32.mxu0 %v3269_v45  ;;  %v5646_v36 = vld [vmem:[%s5334_s8 + $0x129] sm:$0xff] }
  0x47   : > { %4838 = vmatprep.subr.bf16.mxu0 %v4837_v46  ;;  %4708 = vmatpush3.bf16.msra.mxu1 %v4705_v40  ;;  %6643 = vst [vmem:[#allocation12_spill] sm:$0xff] %v5646_v36  ;;  %v5656_v40 = vld [vmem:[%s5334_s8 + $0x92] sm:$0xff] }
  0x48   : > { %3984 = vmatmul.mubr.f32.gmra.mrb[12].mxu1 %v3268_v44  ;;  %4710 = vmatprep.subr.bf16.mxu1 %v4709_v50  ;;  %v3398_v44 = vld [vmem:[%s6590_s1 + $0x368] sm:$0xff] }
  0x49   : > { %4304 = vmatmul.mubr.f32.gmra.mrb[12].mxu0 %v3270_v53  ;;  %3986 = vmatprep.mubr.f32.mxu1 %v3269_v45  ;;  %v5668_v45 = vld [vmem:[%s5334_s8 + $0x141] sm:$0xff] }
  0x4a   : > { %4840 = vmatpush3.bf16.msra.mxu0 %v4837_v46  ;;  %4306 = vmatprep.mubr.f32.mxu0 %v5528_v54  ;;  %6645 = vst [vmem:[#allocation14_spill] sm:$0xff] %v5668_v45  ;;  %v5672_v46 = vld [vmem:[%s5334_s8 + $0x9a] sm:$0xff] }
  0x4b   : > { %4842 = vmatprep.subr.bf16.mxu0 %v4841_v55  ;;  %4712 = vmatpush3.bf16.msra.mxu1 %v4709_v50  ;;  %v4869_v50 = vpack.c.bf16 %v3398_v44, %v3397_v42  ;;  %v5761_v42 = vld [vmem:[%s5334_s8 + $0x30] sm:$0xff] }
  0x4c   : > { %3987 = vmatmul.mubr.f32.gmra.mrb[14].mxu1 %v3270_v53  ;;  %4714 = vmatprep.subr.bf16.mxu1 %v4713_v58  ;;  %v5690_v53 = vld [vmem:[%s5334_s8 + $0x159] sm:$0xff]  ;;  %6650 = vst [vmem:[#allocation19_spill] sm:$0xff] %v5761_v42  ;;  %v5764_v44 = vld [vmem:[%s5334_s8 + $0x10a] sm:$0xff] }
  0x4d   : > { %4307 = vmatmul.mubr.f32.gmra.mrb[14].mxu0 %v5544_v61  ;;  %3989 = vmatprep.mubr.f32.mxu1 %v5528_v54  ;;  %6647 = vst [vmem:[#allocation16_spill] sm:$0xff] %v5690_v53 }
  0x4e   : > { %4844 = vmatpush3.bf16.msra.mxu0 %v4841_v55  ;;  %4365 = vmatprep.mubr.f32.mxu0 %v5547_v62  ;;  %v5694_v55 = vld [vmem:[%s5334_s8 + $0xb2] sm:$0xff] }
  0x4f   : > { %4846 = vmatprep.subr.bf16.mxu0 %v4845_v63  ;;  %4716 = vmatpush3.bf16.msra.mxu1 %v4713_v58  ;;  %v4873_v58 = vpack.c.bf16 %v3400_v52, %v3399_v51  ;;  %v3200_v51 = vld [vmem:[%s6590_s1 + $0x138] sm:$0xff] }
  0x50   : > { %3990 = vmatmul.mubr.f32.gmra.mrb[16].mxu1 %v5544_v61  ;;  %4718 = vmatprep.subr.bf16.mxu1 %v5555_v2  ;;  %v5776_v52 = vld [vmem:[%s5334_s8 + $0x38] sm:$0xff] }
  0x51   : > { %4366 = vmatmul.mubr.f32.vlgmr.msra.gmra.mrb[0].mxu0 %v5561_v3  ;;  %3992 = vmatprep.mubr.f32.mxu1 %v5564_v4  ;;  %6651 = vst [vmem:[#allocation20_spill] sm:$0xff] %v5776_v52 }
  0x52   : > { %4848 = vmatpush3.bf16.msra.mxu0 %v4845_v63  ;;  %4368 = vmatprep.mubr.f32.mxu0 %v5567_v5  ;;  %v5712_v63 = vld [vmem:[%s5334_s8 + $0x171] sm:$0xff] }
  0x53   : > { %4850 = vmatprep.subr.bf16.mxu0 %v4849_v6  ;;  %6649 = vst [vmem:[#allocation18_spill] sm:$0xff] %v5712_v63 }
  0x54   : > { %3993 = vmatmul.mubr.f32.gmra.mrb[18].mxu1 %v5580_v10 }
  0x55   : > { %4369 = vmatmul.mubr.f32.gmra.mrb[2].mxu0 %v5584_v11  ;;  %3995 = vmatprep.mubr.f32.mxu1 %v5587_v13 }
  0x56   : > { %4371 = vmatprep.mubr.f32.mxu0 %v5590_v14  ;;  %4852 = vmatpush3.bf16.msra.mxu0 %v4849_v6  ;;  %v5720_v6 = vld [vmem:[%s5334_s8 + $0xda] sm:$0xff] }
  0x57   : > { %4854 = vmatprep.subr.bf16.mxu0 %v4853_v15 }
  0x58   : > { %3996 = vmatmul.mubr.f32.gmra.mrb[20].mxu1 %v5602_v19 }
  0x59   : > { %4372 = vmatmul.mubr.f32.gmra.mrb[4].mxu0 %v5606_v20  ;;  %3998 = vmatprep.mubr.f32.mxu1 %v5609_v21  ;;  %v3440_v21 = vld [vmem:[%s6590_s1 + $0x3b8] sm:$0xff] }
  0x5a   : > { %4374 = vmatprep.mubr.f32.mxu0 %v5612_v22  ;;  %4856 = vmatpush3.bf16.msra.mxu0 %v4853_v15  ;;  %v3196_v15 = vld [vmem:[%s6590_s1 + $0x118] sm:$0xff] }
  0x5b   : > { %4858 = vmatprep.subr.bf16.mxu0 %v4857_v24  ;;  %v4721_v26 = vpack.c.bf16 %v3196_v15, %v3195_v9  ;;  %v3201_v9 = vld [vmem:[%s6590_s1 + $0x140] sm:$0xff]  ;;  %v3202_v15 = vld [vmem:[%s6590_s1 + $0x148] sm:$0xff] }
  0x5c   : > { %3999 = vmatmul.mubr.f32.gmra.mrb[22].mxu1 %v5624_v27  ;;  %v3435_v27 = vld [vmem:[%s6590_s1 + $0x390] sm:$0xff] }
  0x5d   : > { %4375 = vmatmul.mubr.f32.gmra.mrb[6].mxu0 %v5628_v28  ;;  %4001 = vmatprep.mubr.f32.mxu1 %v5631_v29 }
  0x5e   : > { %4377 = vmatprep.mubr.f32.mxu0 %v5634_v30  ;;  %4860 = vmatpush3.bf16.msra.mxu0 %v4857_v24  ;;  %v5738_v24 = vld [vmem:[%s5334_s8 + $0x18] sm:$0xff] }
  0x5f   : > { %4862 = vmatprep.subr.bf16.mxu0 %v4861_v32 }
  0x60   : > { %4002 = vmatmul.mubr.f32.gmra.mrb[24].mxu1 %v5646_v36  ;;  %v3241_v36 = vld [vmem:[%s6590_s1 + $0x180] sm:$0xff] }
  0x61   : > { %4378 = vmatmul.mubr.f32.gmra.mrb[8].mxu0 %v5650_v38  ;;  %4004 = vmatprep.mubr.f32.mxu1 %v5653_v39  ;;  %v5890_v29 = vpack.c.bf16 %v3242_v17, %v3241_v36  ;;  %v5905_v17 = vld [vmem:[%s5334_s8 + $0xd8] sm:$0xff]  ;;  %v3437_v36 = vld [vmem:[%s6590_s1 + $0x3a0] sm:$0xff] }
  0x62   : > { %4380 = vmatprep.mubr.f32.mxu0 %v5656_v40  ;;  %4864 = vmatpush3.bf16.msra.mxu0 %v4861_v32  ;;  %v3197_v32 = vld [vmem:[%s6590_s1 + $0x120] sm:$0xff] }
  0x63   : > { %4866 = vmatprep.subr.bf16.mxu0 %v4865_v41 }
  0x64   : > { %4005 = vmatmul.mubr.f32.gmra.mrb[26].mxu1 %v5668_v45  ;;  %v3208_v45 = vld [vmem:[%s6590_s1 + $0x178] sm:$0xff] }
  0x65   : > { %4381 = vmatmul.mubr.f32.gmra.mrb[10].mxu0 %v5672_v46  ;;  %4007 = vmatprep.mubr.f32.mxu1 %v5675_v47  ;;  %v3207_v47 = vld [vmem:[%s6590_s1 + $0x170] sm:$0xff] }
  0x66   : > { %4383 = vmatprep.mubr.f32.mxu0 %v5678_v48  ;;  %4868 = vmatpush3.bf16.msra.mxu0 %v4865_v41  ;;  %v5758_v41 = vld [vmem:[%s5334_s8 + $0xfa] sm:$0xff]  ;;  %v4745_v39 = vpack.c.bf16 %v3208_v45, %v3207_v47  ;;  %v3336_v45 = vld [vmem:[%s5334_s8 + $0x18a] sm:$0xff] }
  0x67   : > { %4870 = vmatprep.subr.bf16.mxu0 %v4869_v50  ;;  %v5888_v47 = vld [vmem:[%s5334_s8 + $0xc0] sm:$0xff] }
  0x68   : > { %4008 = vmatmul.mubr.f32.gmra.mrb[28].mxu1 %v5690_v53  ;;  %v5852_v53 = vld [vmem:[%s5334_s8 + $0x16a] sm:$0xff]  ;;  %6662 = vst [vmem:[#allocation31_spill] sm:$0xff] %v5888_v47 }
  0x69   : > { %4384 = vmatmul.mubr.f32.gmra.mrb[12].mxu0 %v5694_v55  ;;  %4010 = vmatprep.mubr.f32.mxu1 %v5697_v56  ;;  %v3206_v56 = vld [vmem:[%s6590_s1 + $0x168] sm:$0xff] }
  0x6a   : > { %4386 = vmatprep.mubr.f32.mxu0 %v5700_v57  ;;  %4872 = vmatpush3.bf16.msra.mxu0 %v4869_v50  ;;  %v4725_v50 = vpack.c.bf16 %v3198_v33, %v3197_v32  ;;  %v5805_v32 = vld [vmem:[%s5334_s8 + $0x60] sm:$0xff]  ;;  %v4741_v31 = vpack.c.bf16 %v3206_v56, %v3205_v37  ;;  %v5868_v37 = vld [vmem:[%s5334_s8 + $0x172] sm:$0xff]  ;;  %v5871_v56 = vld [vmem:[%s5334_s8 + $0xa8] sm:$0xff] }
  0x6b   : > { %4874 = vmatprep.subr.bf16.mxu0 %v4873_v58  ;;  %6654 = vst [vmem:[#allocation23_spill] sm:$0xff] %v5805_v32  ;;  %v5808_v33 = vld [vmem:[%s5334_s8 + $0x13a] sm:$0xff]  ;;  %6660 = vst [vmem:[#allocation29_spill] sm:$0xff] %v5871_v56 }
  0x6c   : > { %4011 = vmatmul.mubr.f32.gmra.mrb[30].mxu1 %v5712_v63 }
  0x6d   : > { %4387 = vmatmul.mubr.f32.gmra.mrb[14].mxu0 %v5716_v0  ;;  %4045 = vmatprep.mubr.f32.mxu1 %v221_v1 }
  0x6e   : > { %4389 = vmatprep.mubr.f32.mxu0 %v5720_v6  ;;  %4876 = vmatpush3.bf16.msra.mxu0 %v4873_v58  ;;  %v5780_v58 = vld [vmem:[%s5334_s8 + $0x112] sm:$0xff] }
  0x6f   : > { %4878 = vmatprep.subr.bf16.mxu0 %v5722_v8 }
  0x70   : > { %4046 = vmatmul.mubr.f32.vlgmr.msra.gmra.mrb[0].mxu1 %v222_v16  ;;  %v5798_v16 = vld [vmem:[%s5334_s8 + $0x50] sm:$0xff] }
  0x71   : > { %4390 = vmatmul.mubr.f32.gmra.mrb[16].mxu0 %v5735_v18  ;;  %4720 = vmatpush3.bf16.msra.mxu1 %v5555_v2  ;;  %v3199_v2 = vld [vmem:[%s6590_s1 + $0x130] sm:$0xff]  ;;  %6653 = vst [vmem:[#allocation22_spill] sm:$0xff] %v5798_v16 }
  0x72   : > { %4048 = vmatprep.mubr.f32.mxu1 %v5738_v24  ;;  %4392 = vmatprep.mubr.f32.mxu0 %v5741_v25  ;;  %v4729_v1 = vpack.c.bf16 %v3200_v51, %v3199_v2  ;;  %v4733_v2 = vpack.c.bf16 %v3202_v15, %v3201_v9  ;;  %v3203_v51 = vld [vmem:[%s6590_s1 + $0x150] sm:$0xff]  ;;  %v5824_v9 = vld [vmem:[%s5334_s8 + $0x142] sm:$0xff]  ;;  %v5827_v15 = vld [vmem:[%s5334_s8 + $0x78] sm:$0xff] }
  0x73   : > { %4722 = vmatprep.subr.bf16.mxu1 %v4721_v26  ;;  %6656 = vst [vmem:[#allocation25_spill] sm:$0xff] %v5827_v15  ;;  %v4737_v63 = vpack.c.bf16 %v3204_v49, %v3203_v51  ;;  %v5846_v49 = vld [vmem:[%s5334_s8 + $0x15a] sm:$0xff]  ;;  %v5849_v51 = vld [vmem:[%s5334_s8 + $0x90] sm:$0xff] }
  0x74   : > { %4049 = vmatmul.mubr.f32.gmra.mrb[2].mxu1 %v5753_v34  ;;  %6658 = vst [vmem:[#allocation27_spill] sm:$0xff] %v5849_v51 }
  0x75   : > { %4393 = vmatmul.mubr.f32.gmra.mrb[18].mxu0 %v5758_v41  ;;  %4051 = vmatprep.mubr.f32.mxu1 %v5761_v42 }
  0x76   : > { %4395 = vmatprep.mubr.f32.mxu0 %v5764_v44  ;;  %4724 = vmatpush3.bf16.msra.mxu1 %v4721_v26  ;;  %v5802_v26 = vld [vmem:[%s5334_s8 + $0x12a] sm:$0xff] }
  0x77   : > { %4726 = vmatprep.subr.bf16.mxu1 %v4725_v50 }
  0x78   : > { %4052 = vmatmul.mubr.f32.gmra.mrb[4].mxu1 %v5776_v52 }
  0x79   : > { %4396 = vmatmul.mubr.f32.gmra.mrb[20].mxu0 %v5780_v58  ;;  %4054 = vmatprep.mubr.f32.mxu1 %v5783_v59 }
  0x7a   : > { %4398 = vmatprep.mubr.f32.mxu0 %v5786_v60  ;;  %4728 = vmatpush3.bf16.msra.mxu1 %v4725_v50  ;;  %v5820_v50 = vld [vmem:[%s5334_s8 + $0x68] sm:$0xff] }
  0x7b   : > { %4730 = vmatprep.subr.bf16.mxu1 %v4729_v1  ;;  %6655 = vst [vmem:[#allocation24_spill] sm:$0xff] %v5820_v50 }
  0x7c   : > { %4055 = vmatmul.mubr.f32.gmra.mrb[6].mxu1 %v5798_v16 }
  0x7d   : > { %4399 = vmatmul.mubr.f32.gmra.mrb[22].mxu0 %v5802_v26  ;;  %4057 = vmatprep.mubr.f32.mxu1 %v5805_v32 }
  0x7e   : > { %4401 = vmatprep.mubr.f32.mxu0 %v5808_v33  ;;  %4732 = vmatpush3.bf16.msra.mxu1 %v4729_v1  ;;  %v5842_v1 = vld [vmem:[%s5334_s8 + $0x80] sm:$0xff] }
  0x7f   : > { %4734 = vmatprep.subr.bf16.mxu1 %v4733_v2  ;;  %6657 = vst [vmem:[#allocation26_spill] sm:$0xff] %v5842_v1 }
  0x80   : > { %4058 = vmatmul.mubr.f32.gmra.mrb[8].mxu1 %v5820_v50 }
  0x81   : > { %4402 = vmatmul.mubr.f32.gmra.mrb[24].mxu0 %v5824_v9  ;;  %4060 = vmatprep.mubr.f32.mxu1 %v5827_v15 }
  0x82   : > { %4404 = vmatprep.mubr.f32.mxu0 %v5830_v43  ;;  %4736 = vmatpush3.bf16.msra.mxu1 %v4733_v2  ;;  %v5864_v2 = vld [vmem:[%s5334_s8 + $0x98] sm:$0xff] }
  0x83   : > { %4738 = vmatprep.subr.bf16.mxu1 %v4737_v63  ;;  %6659 = vst [vmem:[#allocation28_spill] sm:$0xff] %v5864_v2 }
  0x84   : > { %4061 = vmatmul.mubr.f32.gmra.mrb[10].mxu1 %v5842_v1 }
  0x85   : > { %4405 = vmatmul.mubr.f32.gmra.mrb[26].mxu0 %v5846_v49  ;;  %4063 = vmatprep.mubr.f32.mxu1 %v5849_v51 }
  0x86   : > { %4407 = vmatprep.mubr.f32.mxu0 %v5852_v53  ;;  %4740 = vmatpush3.bf16.msra.mxu1 %v4737_v63  ;;  %v5884_v63 = vld [vmem:[%s5334_s8 + $0xb0] sm:$0xff] }
  0x87   : > { %4742 = vmatprep.subr.bf16.mxu1 %v4741_v31  ;;  %6661 = vst [vmem:[#allocation30_spill] sm:$0xff] %v5884_v63 }
  0x88   : > { %4064 = vmatmul.mubr.f32.gmra.mrb[12].mxu1 %v5864_v2 }
  0x89   : > { %4408 = vmatmul.mubr.f32.gmra.mrb[28].mxu0 %v5868_v37  ;;  %4066 = vmatprep.mubr.f32.mxu1 %v5871_v56 }
  0x8a   : > { %4410 = vmatprep.mubr.f32.mxu0 %v3335_v23  ;;  %4744 = vmatpush3.bf16.msra.mxu1 %v4741_v31  ;;  %v5901_v23 = vld [vmem:[%s5334_s8 + $0xc8] sm:$0xff]  ;;  %v4881_v31 = vpack.c.bf16 %v3436_v12, %v3435_v27  ;;  %v5923_v12 = vld [vmem:[%s5334_s8 + $0xf0] sm:$0xff] }
  0x8b   : > { %4746 = vmatprep.subr.bf16.mxu1 %v4745_v39  ;;  %6663 = vst [vmem:[#allocation32_spill] sm:$0xff] %v5901_v23 }
  0x8c   : > { %4067 = vmatmul.mubr.f32.gmra.mrb[14].mxu1 %v5884_v63 }
  0x8d   : > { %4411 = vmatmul.mubr.f32.gmra.mrb[30].mxu0 %v3336_v45  ;;  %4069 = vmatprep.mubr.f32.mxu1 %v5888_v47  ;;  %v3438_v45 = vld [vmem:[%s6590_s1 + $0x3a8] sm:$0xff] }
  0x8e   : > { %4445 = vmatprep.mubr.f32.mxu0 %v5761_v42  ;;  %4748 = vmatpush3.bf16.msra.mxu1 %v4745_v39  ;;  %v5918_v39 = vld [vmem:[%s5334_s8 + $0xe0] sm:$0xff]  ;;  %v4885_v27 = vpack.c.bf16 %v3438_v45, %v3437_v36  ;;  %v5939_v36 = vld [vmem:[%s5334_s8 + $0x108] sm:$0xff] }
  0x8f   : > { %4750 = vmatprep.subr.bf16.mxu1 %v5890_v29  ;;  %v769_v42 = vld [vmem:[%s5334_s8 + $0xa] sm:$0xff] }
  0x90   : > { %4070 = vmatmul.mubr.f32.gmra.mrb[16].mxu1 %v5901_v23 }
  0x91   : > { %4446 = vmatmul.mubr.f32.vlgmr.msra.gmra.mrb[0].mxu0 %v5776_v52  ;;  %4072 = vmatprep.mubr.f32.mxu1 %v5905_v17  ;;  %v3439_v52 = vld [vmem:[%s6590_s1 + $0x3b0] sm:$0xff] }
  0x92   : > { %4880 = vmatpush3.bf16.msra.mxu0 %v5722_v8  ;;  %4448 = vmatprep.mubr.f32.mxu0 %v5783_v59  ;;  %v5935_v8 = vld [vmem:[%s5334_s8 + $0xf8] sm:$0xff]  ;;  %v4889_v45 = vpack.c.bf16 %v3440_v21, %v3439_v52  ;;  %v3441_v59 = vld [vmem:[%s6590_s1 + $0x3c0] sm:$0xff] }
  0x93   : > { %4882 = vmatprep.subr.bf16.mxu0 %v4881_v31  ;;  %v5955_v21 = vld [vmem:[%s5334_s8 + $0x120] sm:$0xff] }
  0x94   : > { %4073 = vmatmul.mubr.f32.gmra.mrb[18].mxu1 %v5918_v39 }
  0x95   : > { %4449 = vmatmul.mubr.f32.gmra.mrb[2].mxu0 %v5798_v16  ;;  %4075 = vmatprep.mubr.f32.mxu1 %v5923_v12  ;;  %v3442_v16 = vld [vmem:[%s6590_s1 + $0x3c8] sm:$0xff] }
  0x96   : > { %4451 = vmatprep.mubr.f32.mxu0 %v5805_v32  ;;  %4884 = vmatpush3.bf16.msra.mxu0 %v4881_v31  ;;  %v5951_v31 = vld [vmem:[%s5334_s8 + $0x110] sm:$0xff]  ;;  %v4893_v52 = vpack.c.bf16 %v3442_v16, %v3441_v59  ;;  %v5971_v59 = vld [vmem:[%s5334_s8 + $0x138] sm:$0xff] }
  0x97   : > { %4886 = vmatprep.subr.bf16.mxu0 %v4885_v27  ;;  %v3443_v32 = vld [vmem:[%s6590_s1 + $0x3d0] sm:$0xff] }
  0x98   : > { %4076 = vmatmul.mubr.f32.gmra.mrb[20].mxu1 %v5935_v8 }
  0x99   : > { %4452 = vmatmul.mubr.f32.gmra.mrb[4].mxu0 %v5820_v50  ;;  %4078 = vmatprep.mubr.f32.mxu1 %v5939_v36  ;;  %v3444_v50 = vld [vmem:[%s6590_s1 + $0x3d8] sm:$0xff] }
  0x9a   : > { %4454 = vmatprep.mubr.f32.mxu0 %v5827_v15  ;;  %4888 = vmatpush3.bf16.msra.mxu0 %v4885_v27  ;;  %v5967_v15 = vld [vmem:[%s5334_s8 + $0x128] sm:$0xff]  ;;  %v4897_v16 = vpack.c.bf16 %v3444_v50, %v3443_v32  ;;  %v3445_v27 = vld [vmem:[%s6590_s1 + $0x3e0] sm:$0xff]  ;;  %v5987_v32 = vld [vmem:[%s5334_s8 + $0x150] sm:$0xff] }
  0x9b   : > { %4890 = vmatprep.subr.bf16.mxu0 %v4889_v45 }
  0x9c   : > { %4079 = vmatmul.mubr.f32.gmra.mrb[22].mxu1 %v5951_v31 }
  0x9d   : > { %4455 = vmatmul.mubr.f32.gmra.mrb[6].mxu0 %v5842_v1  ;;  %4081 = vmatprep.mubr.f32.mxu1 %v5955_v21  ;;  %v3446_v1 = vld [vmem:[%s6590_s1 + $0x3e8] sm:$0xff] }
  0x9e   : > { %4457 = vmatprep.mubr.f32.mxu0 %v5849_v51  ;;  %4892 = vmatpush3.bf16.msra.mxu0 %v4889_v45  ;;  %v5983_v51 = vld [vmem:[%s5334_s8 + $0x140] sm:$0xff]  ;;  %v4901_v50 = vpack.c.bf16 %v3446_v1, %v3445_v27  ;;  %v3447_v45 = vld [vmem:[%s6590_s1 + $0x3f0] sm:$0xff]  ;;  %v6003_v1 = vld [vmem:[%s5334_s8 + $0x168] sm:$0xff] }
  0x9f   : > { %4894 = vmatprep.subr.bf16.mxu0 %v4893_v52  ;;  %v3481_v27 = vld [vmem:[%s6590_s1 + $0x400] sm:$0xff] }
  0xa0   : > { %4082 = vmatmul.mubr.f32.gmra.mrb[24].mxu1 %v5967_v15 }
  0xa1   : > { %4458 = vmatmul.mubr.f32.gmra.mrb[8].mxu0 %v5864_v2  ;;  %4084 = vmatprep.mubr.f32.mxu1 %v5971_v59  ;;  %v3448_v2 = vld [vmem:[%s6590_s1 + $0x3f8] sm:$0xff] }
  0xa2   : > { %4460 = vmatprep.mubr.f32.mxu0 %v5871_v56  ;;  %4896 = vmatpush3.bf16.msra.mxu0 %v4893_v52  ;;  %v5999_v56 = vld [vmem:[%s5334_s8 + $0x158] sm:$0xff]  ;;  %v4905_v52 = vpack.c.bf16 %v3448_v2, %v3447_v45  ;;  %v768_v2 = vld [vmem:[%s5334_s8 + $0x2] sm:$0xff]  ;;  %v3243_v45 = vld [vmem:[%s6590_s1 + $0x190] sm:$0xff] }
  0xa3   : > { %4898 = vmatprep.subr.bf16.mxu0 %v4897_v16 }
  0xa4   : > { %4085 = vmatmul.mubr.f32.gmra.mrb[26].mxu1 %v5983_v51 }
  0xa5   : > { %4461 = vmatmul.mubr.f32.gmra.mrb[10].mxu0 %v5884_v63  ;;  %4087 = vmatprep.mubr.f32.mxu1 %v5987_v32  ;;  %v3482_v63 = vld [vmem:[%s6590_s1 + $0x408] sm:$0xff] }
  0xa6   : > { %4463 = vmatprep.mubr.f32.mxu0 %v5888_v47  ;;  %4900 = vmatpush3.bf16.msra.mxu0 %v4897_v16  ;;  %v6015_v47 = vld [vmem:[%s5334_s8 + $0x170] sm:$0xff]  ;;  %v6019_v16 = vpack.c.bf16 %v3482_v63, %v3481_v27  ;;  %v3245_v63 = vld [vmem:[%s6590_s1 + $0x1a0] sm:$0xff]  ;;  %v3246_v27 = vld [vmem:[%s6590_s1 + $0x1a8] sm:$0xff] }
  0xa7   : > { %4902 = vmatprep.subr.bf16.mxu0 %v4901_v50 }
  0xa8   : > { %4088 = vmatmul.mubr.f32.gmra.mrb[28].mxu1 %v5999_v56 }
  0xa9   : > { %4464 = vmatmul.mubr.f32.gmra.mrb[12].mxu0 %v5901_v23  ;;  %4090 = vmatprep.mubr.f32.mxu1 %v6003_v1  ;;  %v3244_v23 = vld [vmem:[%s6590_s1 + $0x198] sm:$0xff] }
  0xaa   : > { %4466 = vmatprep.mubr.f32.mxu0 %v5905_v17  ;;  %4904 = vmatpush3.bf16.msra.mxu0 %v4901_v50  ;;  %v4753_v50 = vpack.c.bf16 %v3244_v23, %v3243_v45  ;;  %v4757_v23 = vpack.c.bf16 %v3246_v27, %v3245_v63  ;;  %v3254_v45 = vld [vmem:[%s6590_s1 + $0x1e8] sm:$0xff]  ;;  %v3256_v63 = vld [vmem:[%s6590_s1 + $0x1f8] sm:$0xff] }
  0xab   : > { %4906 = vmatprep.subr.bf16.mxu0 %v4905_v52  ;;  %v3383_v27 = vld [vmem:[%s5334_s8 + $0x198] sm:$0xff] }
  0xac   : > { %4091 = vmatmul.mubr.f32.gmra.mrb[30].mxu1 %v6015_v47 }
  0xad   : > { %4467 = vmatmul.mubr.f32.gmra.mrb[14].mxu0 %v5918_v39  ;;  %4125 = vmatprep.mubr.f32.mxu1 %v768_v2  ;;  %v3252_v2 = vld [vmem:[%s6590_s1 + $0x1d8] sm:$0xff] }
  0xae   : > { %4469 = vmatprep.mubr.f32.mxu0 %v5923_v12  ;;  %4908 = vmatpush3.bf16.msra.mxu0 %v4905_v52  ;;  %v3248_v52 = vld [vmem:[%s6590_s1 + $0x1b8] sm:$0xff] }
  0xaf   : > { %4910 = vmatprep.subr.bf16.mxu0 %v6019_v16 }
  0xb0   : > { %4126 = vmatmul.mubr.f32.vlgmr.msra.gmra.mrb[0].mxu1 %v769_v42  ;;  %v3247_v42 = vld [vmem:[%s6590_s1 + $0x1b0] sm:$0xff] }
  0xb1   : > { %4470 = vmatmul.mubr.f32.gmra.mrb[16].mxu0 %v5935_v8  ;;  %4752 = vmatpush3.bf16.msra.mxu1 %v5890_v29  ;;  %v3250_v29 = vld [vmem:[%s6590_s1 + $0x1c8] sm:$0xff] }
  0xb2   : > { %4128 = vmatprep.mubr.f32.mxu1 %v5547_v62  ;;  %4472 = vmatprep.mubr.f32.mxu0 %v5939_v36  ;;  %v4761_v62 = vpack.c.bf16 %v3248_v52, %v3247_v42  ;;  %v3483_v42 = vld [vmem:[%s6590_s1 + $0x410] sm:$0xff] }
  0xb3   : > { %4754 = vmatprep.subr.bf16.mxu1 %v4753_v50  ;;  %v3403_v52 = vld [vmem:[%s5334_s8 + $0x49] sm:$0xff] }
  0xb4   : > { %4129 = vmatmul.mubr.f32.gmra.mrb[2].mxu1 %v5561_v3  ;;  %v3249_v3 = vld [vmem:[%s6590_s1 + $0x1c0] sm:$0xff] }
  0xb5   : > { %4473 = vmatmul.mubr.f32.gmra.mrb[18].mxu0 %v5951_v31  ;;  %4131 = vmatprep.mubr.f32.mxu1 %v5567_v5  ;;  %v4765_v5 = vpack.c.bf16 %v3250_v29, %v3249_v3  ;;  %v3486_v3 = vld [vmem:[%s6590_s1 + $0x428] sm:$0xff] }
  0xb6   : > { %4475 = vmatprep.mubr.f32.mxu0 %v5955_v21  ;;  %4756 = vmatpush3.bf16.msra.mxu1 %v4753_v50  ;;  %v3255_v50 = vld [vmem:[%s6590_s1 + $0x1f0] sm:$0xff]  ;;  %v3405_v29 = vld [vmem:[%s5334_s8 + $0x61] sm:$0xff] }
  0xb7   : > { %4758 = vmatprep.subr.bf16.mxu1 %v4757_v23 }
  0xb8   : > { %4132 = vmatmul.mubr.f32.gmra.mrb[4].mxu1 %v5584_v11  ;;  %v3251_v11 = vld [vmem:[%s6590_s1 + $0x1d0] sm:$0xff] }
  0xb9   : > { %4476 = vmatmul.mubr.f32.gmra.mrb[20].mxu0 %v5967_v15  ;;  %4134 = vmatprep.mubr.f32.mxu1 %v5590_v14  ;;  %v4769_v14 = vpack.c.bf16 %v3252_v2, %v3251_v11  ;;  %v3488_v11 = vld [vmem:[%s6590_s1 + $0x438] sm:$0xff] }
  0xba   : > { %4478 = vmatprep.mubr.f32.mxu0 %v5971_v59  ;;  %4760 = vmatpush3.bf16.msra.mxu1 %v4757_v23  ;;  %v3384_v23 = vld [vmem:[%s5334_s8 + $0x1a0] sm:$0xff] }
  0xbb   : > { %4762 = vmatprep.subr.bf16.mxu1 %v4761_v62 }
  0xbc   : > { %4135 = vmatmul.mubr.f32.gmra.mrb[6].mxu1 %v5606_v20  ;;  %v3253_v20 = vld [vmem:[%s6590_s1 + $0x1e0] sm:$0xff] }
  0xbd   : > { %4479 = vmatmul.mubr.f32.gmra.mrb[22].mxu0 %v5983_v51  ;;  %4137 = vmatprep.mubr.f32.mxu1 %v5612_v22  ;;  %v6083_v22 = vld [vmem:[%s5334_s8 + $0x180] sm:$0xff] }
  0xbe   : > { %4481 = vmatprep.mubr.f32.mxu0 %v5987_v32  ;;  %4764 = vmatpush3.bf16.msra.mxu1 %v4761_v62 }
  0xbf   : > { %4766 = vmatprep.subr.bf16.mxu1 %v4765_v5 }
  0xc0   : > { %4138 = vmatmul.mubr.f32.gmra.mrb[8].mxu1 %v5628_v28  ;;  %v4773_v28 = vpack.c.bf16 %v3254_v45, %v3253_v20  ;;  %v3492_v45 = vld [vmem:[%s6590_s1 + $0x458] sm:$0xff] }
  0xc1   : > { %4482 = vmatmul.mubr.f32.gmra.mrb[24].mxu0 %v5999_v56  ;;  %4140 = vmatprep.mubr.f32.mxu1 %v5634_v30  ;;  %v6096_v30 = vld [vmem:[%s5334_s8 + $0x188] sm:$0xff] }
  0xc2   : > { %4484 = vmatprep.mubr.f32.mxu0 %v6003_v1  ;;  %4768 = vmatpush3.bf16.msra.mxu1 %v4765_v5  ;;  %v3487_v5 = vld [vmem:[%s6590_s1 + $0x430] sm:$0xff] }
  0xc3   : > { %4770 = vmatprep.subr.bf16.mxu1 %v4769_v14  ;;  %v4921_v2 = vpack.c.bf16 %v3488_v11, %v3487_v5  ;;  %v6220_v5 = vld [vmem:[%s5334_s8 + $0x189] sm:$0xff]  ;;  %v3431_v11 = vld [vmem:[%s5334_s8 + $0x199] sm:$0xff] }
  0xc4   : > { %4141 = vmatmul.mubr.f32.gmra.mrb[10].mxu1 %v5650_v38  ;;  %v4777_v38 = vpack.c.bf16 %v3256_v63, %v3255_v50  ;;  %v3494_v63 = vld [vmem:[%s6590_s1 + $0x468] sm:$0xff] }
  0xc5   : > { %4485 = vmatmul.mubr.f32.gmra.mrb[26].mxu0 %v6015_v47  ;;  %4143 = vmatprep.mubr.f32.mxu1 %v5656_v40  ;;  %v3401_v40 = vld [vmem:[%s5334_s8 + $0x31] sm:$0xff] }
  0xc6   : > { %4487 = vmatprep.mubr.f32.mxu0 %v6083_v22  ;;  %4772 = vmatpush3.bf16.msra.mxu1 %v4769_v14  ;;  %v3490_v14 = vld [vmem:[%s6590_s1 + $0x448] sm:$0xff] }
  0xc7   : > { %4774 = vmatprep.subr.bf16.mxu1 %v4773_v28 }
  0xc8   : > { %4144 = vmatmul.mubr.f32.gmra.mrb[12].mxu1 %v5672_v46  ;;  %v3484_v46 = vld [vmem:[%s6590_s1 + $0x418] sm:$0xff] }
  0xc9   : > { %4488 = vmatmul.mubr.f32.gmra.mrb[28].mxu0 %v6096_v30  ;;  %4146 = vmatprep.mubr.f32.mxu1 %v5678_v48  ;;  %v3402_v48 = vld [vmem:[%s5334_s8 + $0x39] sm:$0xff]  ;;  %v4913_v62 = vpack.c.bf16 %v3484_v46, %v3483_v42 }
  0xca   : > { %4490 = vmatprep.mubr.f32.mxu0 %v3383_v27  ;;  %4776 = vmatpush3.bf16.msra.mxu1 %v4773_v28  ;;  %v3411_v28 = vld [vmem:[%s5334_s8 + $0xa9] sm:$0xff]  ;;  %v3496_v27 = vld [vmem:[%s6590_s1 + $0x478] sm:$0xff]  ;;  %v6682_v46 = vld [vmem:[#allocation26_spill] sm:$0xff] }
  0xcb   : > { %4778 = vmatprep.subr.bf16.mxu1 %v4777_v38  ;;  %v6681_v42 = vld [vmem:[#allocation5_spill] sm:$0xff] }
  0xcc   : > { %4147 = vmatmul.mubr.f32.gmra.mrb[14].mxu1 %v5694_v55  ;;  %v3485_v55 = vld [vmem:[%s6590_s1 + $0x420] sm:$0xff] }
  0xcd   : > { %4491 = vmatmul.mubr.f32.gmra.mrb[30].mxu0 %v3384_v23  ;;  %4149 = vmatprep.mubr.f32.mxu1 %v5700_v57  ;;  %v3404_v57 = vld [vmem:[%s5334_s8 + $0x51] sm:$0xff] }
  0xce   : > { %4525 = vmatprep.mubr.f32.mxu0 %v3401_v40  ;;  %4780 = vmatpush3.bf16.msra.mxu1 %v4777_v38  ;;  %v6678_v38 = vld [vmem:[#allocation14_spill] sm:$0xff]  ;;  %v6679_v23 = vld [vmem:[#allocation25_spill] sm:$0xff]  ;;  %v6680_v40 = vld [vmem:[#allocation15_spill] sm:$0xff] }
  0xcf   : > { %4941 = vmatprep.subr.bf16.mxu1 %v5291_v7 }
  0xd0   : > { %4150 = vmatmul.mubr.f32.gmra.mrb[16].mxu1 %v5716_v0  ;;  %v4917_v0 = vpack.c.bf16 %v3486_v3, %v3485_v55  ;;  %v6212_v55 = vld [vmem:[%s5334_s8 + $0x181] sm:$0xff] }
  0xd1   : > { %4526 = vmatmul.mubr.f32.vlgmr.msra.gmra.mrb[0].mxu0 %v3402_v48  ;;  %4152 = vmatprep.mubr.f32.mxu1 %v5720_v6  ;;  %v3406_v6 = vld [vmem:[%s5334_s8 + $0x69] sm:$0xff]  ;;  %v6686_v3 = vld [vmem:[#allocation6_spill] sm:$0xff] }
  0xd2   : > { %4912 = vmatpush3.bf16.msra.mxu0 %v6019_v16  ;;  %4528 = vmatprep.mubr.f32.mxu0 %v3403_v52  ;;  %v3407_v16 = vld [vmem:[%s5334_s8 + $0x79] sm:$0xff]  ;;  %v6683_v48 = vld [vmem:[#allocation16_spill] sm:$0xff]  ;;  %v6684_v52 = vld [vmem:[#allocation27_spill] sm:$0xff] }
  0xd3   : > { %4914 = vmatprep.subr.bf16.mxu0 %v4913_v62 }
  0xd4   : > { %4153 = vmatmul.mubr.f32.gmra.mrb[18].mxu1 %v5735_v18  ;;  %v3489_v18 = vld [vmem:[%s6590_s1 + $0x440] sm:$0xff] }
  0xd5   : > { %4529 = vmatmul.mubr.f32.gmra.mrb[2].mxu0 %v3404_v57  ;;  %4155 = vmatprep.mubr.f32.mxu1 %v5741_v25  ;;  %v3408_v25 = vld [vmem:[%s5334_s8 + $0x81] sm:$0xff]  ;;  %v4925_v20 = vpack.c.bf16 %v3490_v14, %v3489_v18  ;;  %v6687_v57 = vld [vmem:[#allocation28_spill] sm:$0xff] }
  0xd6   : > { %4531 = vmatprep.mubr.f32.mxu0 %v3405_v29  ;;  %4916 = vmatpush3.bf16.msra.mxu0 %v4913_v62  ;;  %v6685_v62 = vld [vmem:[#allocation17_spill] sm:$0xff]  ;;  %v6688_v29 = vld [vmem:[#allocation18_spill] sm:$0xff] }
  0xd7   : > { %4918 = vmatprep.subr.bf16.mxu0 %v4917_v0  ;;  %v3432_v18 = vld [vmem:[%s5334_s8 + $0x1a1] sm:$0xff]  ;;  %v3449_v14 = vld [vmem:[%s5334_s8 + $0x32] sm:$0xff] }
  0xd8   : > { %4156 = vmatmul.mubr.f32.gmra.mrb[20].mxu1 %v5758_v41  ;;  %v3491_v41 = vld [vmem:[%s6590_s1 + $0x450] sm:$0xff] }
  0xd9   : > { %4532 = vmatmul.mubr.f32.gmra.mrb[4].mxu0 %v3406_v6  ;;  %4158 = vmatprep.mubr.f32.mxu1 %v5764_v44  ;;  %v3410_v44 = vld [vmem:[%s5334_s8 + $0x99] sm:$0xff]  ;;  %v4929_v50 = vpack.c.bf16 %v3492_v45, %v3491_v41  ;;  %v6690_v6 = vld [vmem:[#allocation7_spill] sm:$0xff] }
  0xda   : > { %4534 = vmatprep.mubr.f32.mxu0 %v3407_v16  ;;  %4920 = vmatpush3.bf16.msra.mxu0 %v4917_v0  ;;  %v6689_v0 = vld [vmem:[#allocation29_spill] sm:$0xff]  ;;  %v6691_v16 = vld [vmem:[#allocation30_spill] sm:$0xff]  ;;  %v3451_v45 = vld [vmem:[%s5334_s8 + $0x4a] sm:$0xff] }
  0xdb   : > { %4922 = vmatprep.subr.bf16.mxu0 %v4921_v2  ;;  %v3450_v41 = vld [vmem:[%s5334_s8 + $0x3a] sm:$0xff] }
  0xdc   : > { %4159 = vmatmul.mubr.f32.gmra.mrb[22].mxu1 %v5780_v58  ;;  %v3493_v58 = vld [vmem:[%s6590_s1 + $0x460] sm:$0xff] }
  0xdd   : > { %4535 = vmatmul.mubr.f32.gmra.mrb[6].mxu0 %v3408_v25  ;;  %4161 = vmatprep.mubr.f32.mxu1 %v5786_v60  ;;  %v4933_v60 = vpack.c.bf16 %v3494_v63, %v3493_v58  ;;  %v6693_v25 = vld [vmem:[#allocation8_spill] sm:$0xff]  ;;  %v3466_v58 = vld [vmem:[%s5334_s8 + $0xfa] sm:$0xff] }
  0xde   : > { %4537 = vmatprep.mubr.f32.mxu0 %v5496_v35  ;;  %4924 = vmatpush3.bf16.msra.mxu0 %v4921_v2  ;;  %v3412_v35 = vld [vmem:[%s5334_s8 + $0xb1] sm:$0xff]  ;;  %v6692_v2 = vld [vmem:[#allocation31_spill] sm:$0xff]  ;;  %v3276_v63 = vld [vmem:[%s5334_s8 + $0xf9] sm:$0xff] }
  0xdf   : > { %4926 = vmatprep.subr.bf16.mxu0 %v4925_v20 }
  0xe0   : > { %4162 = vmatmul.mubr.f32.gmra.mrb[24].mxu1 %v5802_v26  ;;  %v3495_v26 = vld [vmem:[%s6590_s1 + $0x470] sm:$0xff] }
  0xe1   : > { %4538 = vmatmul.mubr.f32.gmra.mrb[8].mxu0 %v3410_v44  ;;  %4164 = vmatprep.mubr.f32.mxu1 %v5808_v33  ;;  %v4937_v33 = vpack.c.bf16 %v3496_v27, %v3495_v26  ;;  %v3452_v44 = vld [vmem:[%s5334_s8 + $0x52] sm:$0xff]  ;;  %v3470_v27 = vld [vmem:[%s5334_s8 + $0x12a] sm:$0xff] }
  0xe2   : > { %4540 = vmatprep.mubr.f32.mxu0 %v3411_v28  ;;  %4928 = vmatpush3.bf16.msra.mxu0 %v4925_v20  ;;  %v6694_v20 = vld [vmem:[#allocation32_spill] sm:$0xff]  ;;  %v3453_v28 = vld [vmem:[%s5334_s8 + $0x62] sm:$0xff] }
  0xe3   : > { %4930 = vmatprep.subr.bf16.mxu0 %v4929_v50  ;;  %v3278_v26 = vld [vmem:[%s5334_s8 + $0x111] sm:$0xff] }
  0xe4   : > { %4165 = vmatmul.mubr.f32.gmra.mrb[26].mxu1 %v5824_v9  ;;  %v6675_v9 = vld [vmem:[#allocation13_spill] sm:$0xff] }
  0xe5   : > { %4541 = vmatmul.mubr.f32.gmra.mrb[10].mxu0 %v3412_v35  ;;  %4167 = vmatprep.mubr.f32.mxu1 %v5830_v43  ;;  %v6664_v43 = vld [vmem:[#allocation19_spill] sm:$0xff]  ;;  %v3468_v35 = vld [vmem:[%s5334_s8 + $0x112] sm:$0xff] }
  0xe6   : > { %4543 = vmatprep.mubr.f32.mxu0 %v5528_v54  ;;  %4932 = vmatpush3.bf16.msra.mxu0 %v4929_v50  ;;  %v6665_v54 = vld [vmem:[#allocation9_spill] sm:$0xff] }
  0xe7   : > { %4934 = vmatprep.subr.bf16.mxu0 %v4933_v60  ;;  %v3455_v50 = vld [vmem:[%s5334_s8 + $0x7a] sm:$0xff] }
  0xe8   : > { %4168 = vmatmul.mubr.f32.gmra.mrb[28].mxu1 %v5846_v49  ;;  %v6676_v49 = vld [vmem:[#allocation4_spill] sm:$0xff] }
  0xe9   : > { %4544 = vmatmul.mubr.f32.gmra.mrb[12].mxu0 %v5544_v61  ;;  %4170 = vmatprep.mubr.f32.mxu1 %v5852_v53  ;;  %v6666_v61 = vld [vmem:[#allocation2_spill] sm:$0xff]  ;;  %v6669_v53 = vld [vmem:[#allocation21_spill] sm:$0xff] }
  0xea   : > { %4546 = vmatprep.mubr.f32.mxu0 %v5564_v4  ;;  %4936 = vmatpush3.bf16.msra.mxu0 %v4933_v60  ;;  %v6667_v4 = vld [vmem:[#allocation20_spill] sm:$0xff]  ;;  %v3469_v60 = vld [vmem:[%s5334_s8 + $0x122] sm:$0xff] }
  0xeb   : > { %4938 = vmatprep.subr.bf16.mxu0 %v4937_v33 }
  0xec   : > { %4171 = vmatmul.mubr.f32.gmra.mrb[30].mxu1 %v5868_v37  ;;  %v6677_v37 = vld [vmem:[#allocation24_spill] sm:$0xff] }
  0xed   : > { %4547 = vmatmul.mubr.f32.gmra.mrb[14].mxu0 %v5580_v10  ;;  %4205 = vmatprep.mubr.f32.mxu1 %v5738_v24  ;;  %v6668_v10 = vld [vmem:[#allocation10_spill] sm:$0xff]  ;;  %v6671_v24 = vld [vmem:[#allocation3_spill] sm:$0xff] }
  0xee   : > { %4549 = vmatprep.mubr.f32.mxu0 %v5587_v13  ;;  %4940 = vmatpush3.bf16.msra.mxu0 %v4937_v33  ;;  %v6670_v13 = vld [vmem:[#allocation11_spill] sm:$0xff] }
  0xef   : > { %v3279_v33 = vld [vmem:[%s5334_s8 + $0x121] sm:$0xff] }
  0xf0   : > { %4206 = vmatmul.mubr.f32.vlgmr.msra.gmra.mrb[0].mxu1 %v5753_v34  ;;  %v6674_v34 = vld [vmem:[#allocation23_spill] sm:$0xff] }
  0xf1   : > { %4550 = vmatmul.mubr.f32.gmra.mrb[16].mxu0 %v5602_v19  ;;  %4949 = vmatpush3.bf16.msra.mxu1 %v5291_v7  ;;  %v6672_v19 = vld [vmem:[#allocation22_spill] sm:$0xff]  ;;  %v6673_v7 = vld [vmem:[#allocation12_spill] sm:$0xff] }
  0xf2   : > { %4208 = vmatprep.mubr.f32.mxu1 %v6664_v43  ;;  %4552 = vmatprep.mubr.f32.mxu0 %v6665_v54  ;;  %v3471_v43 = vld [vmem:[%s5334_s8 + $0x13a] sm:$0xff]  ;;  %v3280_v54 = vld [vmem:[%s5334_s8 + $0x129] sm:$0xff] }
  0xf3   : > { %4942 = vmatprep.subr.bf16.mxu1 %v6666_v61 }
  0xf4   : > { %4209 = vmatmul.mubr.f32.gmra.mrb[2].mxu1 %v6667_v4  ;;  %v3281_v4 = vld [vmem:[%s5334_s8 + $0x139] sm:$0xff] }
  0xf5   : > { %4553 = vmatmul.mubr.f32.gmra.mrb[18].mxu0 %v6668_v10  ;;  %4211 = vmatprep.mubr.f32.mxu1 %v6669_v53  ;;  %v3473_v10 = vld [vmem:[%s5334_s8 + $0x152] sm:$0xff]  ;;  %v3282_v53 = vld [vmem:[%s5334_s8 + $0x141] sm:$0xff] }
  0xf6   : > { %4555 = vmatprep.mubr.f32.mxu0 %v6670_v13  ;;  %4950 = vmatpush3.bf16.msra.mxu1 %v6666_v61  ;;  %v3472_v61 = vld [vmem:[%s5334_s8 + $0x142] sm:$0xff]  ;;  %v3474_v13 = vld [vmem:[%s5334_s8 + $0x15a] sm:$0xff] }
  0xf7   : > { %4943 = vmatprep.subr.bf16.mxu1 %v6671_v24 }
  0xf8   : > { %4212 = vmatmul.mubr.f32.gmra.mrb[4].mxu1 %v6672_v19  ;;  %v3475_v19 = vld [vmem:[%s5334_s8 + $0x16a] sm:$0xff] }
  0xf9   : > { %4556 = vmatmul.mubr.f32.gmra.mrb[20].mxu0 %v6673_v7  ;;  %4214 = vmatprep.mubr.f32.mxu1 %v6674_v34  ;;  %v3284_v7 = vld [vmem:[%s5334_s8 + $0x159] sm:$0xff] }
  0xfa   : > { %4558 = vmatprep.mubr.f32.mxu0 %v6675_v9  ;;  %4951 = vmatpush3.bf16.msra.mxu1 %v6671_v24  ;;  %v3283_v24 = vld [vmem:[%s5334_s8 + $0x151] sm:$0xff]  ;;  %v3285_v9 = vld [vmem:[%s5334_s8 + $0x169] sm:$0xff] }
  0xfb   : > { %4944 = vmatprep.subr.bf16.mxu1 %v6676_v49  ;;  %v3476_v34 = vld [vmem:[%s5334_s8 + $0x172] sm:$0xff] }
  0xfc   : > { %4215 = vmatmul.mubr.f32.gmra.mrb[6].mxu1 %v6677_v37  ;;  %v3286_v37 = vld [vmem:[%s5334_s8 + $0x171] sm:$0xff] }
  0xfd   : > { %4559 = vmatmul.mubr.f32.gmra.mrb[22].mxu0 %v6678_v38  ;;  %4217 = vmatprep.mubr.f32.mxu1 %v6679_v23  ;;  %v3478_v38 = vld [vmem:[%s5334_s8 + $0x18a] sm:$0xff]  ;;  %v3479_v23 = vld [vmem:[%s5334_s8 + $0x19a] sm:$0xff] }
  0xfe   : > { %4561 = vmatprep.mubr.f32.mxu0 %v6680_v40  ;;  %4952 = vmatpush3.bf16.msra.mxu1 %v6676_v49  ;;  %v3477_v49 = vld [vmem:[%s5334_s8 + $0x182] sm:$0xff] }
  0xff   : > { %4945 = vmatprep.subr.bf16.mxu1 %v6681_v42  ;;  %v3480_v40 = vld [vmem:[%s5334_s8 + $0x1a2] sm:$0xff] }
 0x100   : > { %4218 = vmatmul.mubr.f32.gmra.mrb[8].mxu1 %v6682_v46 }
 0x101   : > { %4562 = vmatmul.mubr.f32.gmra.mrb[24].mxu0 %v6683_v48  ;;  %4220 = vmatprep.mubr.f32.mxu1 %v6684_v52 }
 0x102   : > { %4564 = vmatprep.mubr.f32.mxu0 %v6685_v62  ;;  %4953 = vmatpush3.bf16.msra.mxu1 %v6681_v42 }
 0x103   : > { %4946 = vmatprep.subr.bf16.mxu1 %v6686_v3 }
 0x104   : > { %4221 = vmatmul.mubr.f32.gmra.mrb[10].mxu1 %v6687_v57 }
 0x105   : > { %4565 = vmatmul.mubr.f32.gmra.mrb[26].mxu0 %v6688_v29  ;;  %4223 = vmatprep.mubr.f32.mxu1 %v6689_v0 }
 0x106   : > { %4567 = vmatprep.mubr.f32.mxu0 %v6212_v55  ;;  %4954 = vmatpush3.bf16.msra.mxu1 %v6686_v3 }
 0x107   : > { %4947 = vmatprep.subr.bf16.mxu1 %v6690_v6 }
 0x108   : > { %4224 = vmatmul.mubr.f32.gmra.mrb[12].mxu1 %v6691_v16 }
 0x109   : > { %4568 = vmatmul.mubr.f32.gmra.mrb[28].mxu0 %v6220_v5  ;;  %4226 = vmatprep.mubr.f32.mxu1 %v6692_v2 }
 0x10a   : > { %4570 = vmatprep.mubr.f32.mxu0 %v3431_v11  ;;  %4955 = vmatpush3.bf16.msra.mxu1 %v6690_v6 }
 0x10b   : > { %4948 = vmatprep.subr.bf16.mxu1 %v6693_v25 }
 0x10c   : > { %4227 = vmatmul.mubr.f32.gmra.mrb[14].mxu1 %v6694_v20 }
 0x10d   : > { %4571 = vmatmul.mubr.f32.gmra.mrb[30].mxu0 %v3432_v18  ;;  %4229 = vmatprep.mubr.f32.mxu1 %v5905_v17  ;;  %v3454_v17 = vld [vmem:[%s5334_s8 + $0x6a] sm:$0xff] }
 0x10e   : > { %4605 = vmatprep.mubr.f32.mxu0 %v3449_v14  ;;  %4956 = vmatpush3.bf16.msra.mxu1 %v6693_v25  ;;  %v6303_v25 = vld [vmem:[%s6591_s2] ss:$0 sm:$0xff] }
 0x110   : > { %4230 = vmatmul.mubr.f32.gmra.mrb[16].mxu1 %v5918_v39  ;;  %v3456_v39 = vld [vmem:[%s5334_s8 + $0x82] sm:$0xff] }
 0x111   : > { %4606 = vmatmul.mubr.f32.vlgmr.msra.gmra.mrb[0].mxu0 %v3450_v41  ;;  %4232 = vmatprep.mubr.f32.mxu1 %v5923_v12  ;;  %v3457_v12 = vld [vmem:[%s5334_s8 + $0x92] sm:$0xff] }
 0x112   : > { %4608 = vmatprep.mubr.f32.mxu0 %v3451_v45 }
 0x114   : > { %4233 = vmatmul.mubr.f32.gmra.mrb[18].mxu1 %v5935_v8  ;;  %v3458_v8 = vld [vmem:[%s5334_s8 + $0x9a] sm:$0xff] }
 0x115   : > { %4609 = vmatmul.mubr.f32.gmra.mrb[2].mxu0 %v3452_v44  ;;  %4235 = vmatprep.mubr.f32.mxu1 %v5939_v36  ;;  %v3459_v36 = vld [vmem:[%s5334_s8 + $0xaa] sm:$0xff] }
 0x116   : > { %4611 = vmatprep.mubr.f32.mxu0 %v3453_v28 }
 0x118   : > { %4236 = vmatmul.mubr.f32.gmra.mrb[20].mxu1 %v5951_v31  ;;  %v3460_v31 = vld [vmem:[%s5334_s8 + $0xb2] sm:$0xff] }
 0x119   : > { %4612 = vmatmul.mubr.f32.gmra.mrb[4].mxu0 %v3454_v17  ;;  %4238 = vmatprep.mubr.f32.mxu1 %v5955_v21  ;;  %v3461_v21 = vld [vmem:[%s5334_s8 + $0xc2] sm:$0xff] }
 0x11a   : > { %4614 = vmatprep.mubr.f32.mxu0 %v3455_v50 }
 0x11c   : > { %4239 = vmatmul.mubr.f32.gmra.mrb[22].mxu1 %v5967_v15  ;;  %v3462_v15 = vld [vmem:[%s5334_s8 + $0xca] sm:$0xff] }
 0x11d   : > { %4615 = vmatmul.mubr.f32.gmra.mrb[6].mxu0 %v3456_v39  ;;  %4241 = vmatprep.mubr.f32.mxu1 %v5971_v59  ;;  %v3464_v59 = vld [vmem:[%s5334_s8 + $0xe2] sm:$0xff] }
 0x11e   : > { %4617 = vmatprep.mubr.f32.mxu0 %v3457_v12 }
 0x120   : > { %4242 = vmatmul.mubr.f32.gmra.mrb[24].mxu1 %v5983_v51  ;;  %v3463_v51 = vld [vmem:[%s5334_s8 + $0xda] sm:$0xff] }
 0x121   : > { %4618 = vmatmul.mubr.f32.gmra.mrb[8].mxu0 %v3458_v8  ;;  %4244 = vmatprep.mubr.f32.mxu1 %v5987_v32  ;;  %v3465_v32 = vld [vmem:[%s5334_s8 + $0xf2] sm:$0xff] }
 0x122   : > { %4620 = vmatprep.mubr.f32.mxu0 %v3459_v36 }
 0x124   : > { %4245 = vmatmul.mubr.f32.gmra.mrb[26].mxu1 %v5999_v56  ;;  %v3273_v56 = vld [vmem:[%s5334_s8 + $0xd9] sm:$0xff] }
 0x125   : > { %4621 = vmatmul.mubr.f32.gmra.mrb[10].mxu0 %v3460_v31  ;;  %4247 = vmatprep.mubr.f32.mxu1 %v6003_v1  ;;  %v3274_v1 = vld [vmem:[%s5334_s8 + $0xe1] sm:$0xff] }
 0x126   : > { %4623 = vmatprep.mubr.f32.mxu0 %v3461_v21 }
 0x128   : > { %4248 = vmatmul.mubr.f32.gmra.mrb[28].mxu1 %v6015_v47  ;;  %v3275_v47 = vld [vmem:[%s5334_s8 + $0xf1] sm:$0xff] }
 0x129   : > { %4624 = vmatmul.mubr.f32.gmra.mrb[12].mxu0 %v3462_v15  ;;  %4250 = vmatprep.mubr.f32.mxu1 %v6083_v22  ;;  %v3467_v22 = vld [vmem:[%s5334_s8 + $0x10a] sm:$0xff] }
 0x12a   : > { %4626 = vmatprep.mubr.f32.mxu0 %v3463_v51 }
 0x12c   : > { %4251 = vmatmul.mubr.f32.gmra.mrb[30].mxu1 %v6096_v30  ;;  %v3277_v30 = vld [vmem:[%s5334_s8 + $0x109] sm:$0xff]  ;;  %s3176_s8 = sshll.u32 %s6696_s25, 3 }
 0x12d   : > { %4627 = vmatmul.mubr.f32.gmra.mrb[14].mxu0 %v3464_v59  ;;  %4309 = vmatprep.mubr.f32.mxu1 %v3273_v56  ;;  %s6308_s30 = scalar_lea.vmem %s6592_s3, %s3176_s8 }
 0x12e   : > { %4629 = vmatprep.mubr.f32.mxu0 %v3465_v32 }
 0x130   : > { %4310 = vmatmul.mubr.f32.vlgmr.msra.gmra.mrb[16].mxu1 %v3274_v1 }
 0x131   : > { %4630 = vmatmul.mubr.f32.gmra.mrb[16].mxu0 %v3466_v58  ;;  %4312 = vmatprep.mubr.f32.mxu1 %v3275_v47 }
 0x132   : > { %4632 = vmatprep.mubr.f32.mxu0 %v3467_v22 }
 0x134   : > { %4313 = vmatmul.mubr.f32.gmra.mrb[18].mxu1 %v3276_v63 }
 0x135   : > { %4633 = vmatmul.mubr.f32.gmra.mrb[18].mxu0 %v3468_v35  ;;  %4315 = vmatprep.mubr.f32.mxu1 %v3277_v30 }
 0x136   : > { %4635 = vmatprep.mubr.f32.mxu0 %v3469_v60 }
 0x138   : > { %4316 = vmatmul.mubr.f32.gmra.mrb[20].mxu1 %v3278_v26 }
 0x139   : > { %4636 = vmatmul.mubr.f32.gmra.mrb[20].mxu0 %v3470_v27  ;;  %4318 = vmatprep.mubr.f32.mxu1 %v3279_v33 }
 0x13a   : > { %4638 = vmatprep.mubr.f32.mxu0 %v3471_v43 }
 0x13c   : > { %4319 = vmatmul.mubr.f32.gmra.mrb[22].mxu1 %v3280_v54 }
 0x13d   : > { %4639 = vmatmul.mubr.f32.gmra.mrb[22].mxu0 %v3472_v61  ;;  %4321 = vmatprep.mubr.f32.mxu1 %v3281_v4 }
 0x13e   : > { %4641 = vmatprep.mubr.f32.mxu0 %v3473_v10 }
 0x140   : > { %4322 = vmatmul.mubr.f32.gmra.mrb[24].mxu1 %v3282_v53 }
 0x141   : > { %4642 = vmatmul.mubr.f32.gmra.mrb[24].mxu0 %v3474_v13  ;;  %4324 = vmatprep.mubr.f32.mxu1 %v3283_v24 }
 0x142   : > { %4644 = vmatprep.mubr.f32.mxu0 %v3475_v19 }
 0x144   : > { %4325 = vmatmul.mubr.f32.gmra.mrb[26].mxu1 %v3284_v7 }
 0x145   : > { %4645 = vmatmul.mubr.f32.gmra.mrb[26].mxu0 %v3476_v34  ;;  %4327 = vmatprep.mubr.f32.mxu1 %v3285_v9 }
 0x146   : > { %4647 = vmatprep.mubr.f32.mxu0 %v3477_v49 }
 0x148   : > { %4328 = vmatmul.mubr.f32.gmra.mrb[28].mxu1 %v3286_v37 }
 0x149   : > { %4648 = vmatmul.mubr.f32.gmra.mrb[28].mxu0 %v3478_v38  ;;  %4330 = vmatprep.mubr.f32.mxu1 %v6212_v55 }
 0x14a   : > { %4650 = vmatprep.mubr.f32.mxu0 %v3479_v23 }
 0x14c   : > { %4331 = vmatmul.mubr.f32.gmra.mrb[30].mxu1 %v6220_v5 }
 0x14d   : > { %4651 = vmatmul.mubr.f32.gmra.mrb[30].mxu0 %v3480_v40 }
 0x1c3   : > { %v4207_v42 = vpop.f32.mrb[0].mxu1 }
 0x1c4   : > { %v1190_v46 = vpop.f32.mrb[1].mxu1 }
 0x1c7   : > { %v4210_v48 = vpop.f32.mrb[2].mxu1 }
 0x1c8   : > { %v1200_v52 = vpop.f32.mrb[3].mxu1 }
 0x1cb   : > { %v4213_v62 = vpop.f32.mrb[4].mxu1 }
 0x1cc   : > { %v1210_v3 = vpop.f32.mrb[5].mxu1 }
 0x1cf   : > { %v4216_v57 = vpop.f32.mrb[6].mxu1 }
 0x1d0   : > { %v1220_v29 = vpop.f32.mrb[7].mxu1 }
 0x1d3   : > { %v4219_v0 = vpop.f32.mrb[8].mxu1 }
 0x1d4   : > { %v1230_v11 = vpop.f32.mrb[9].mxu1 }
 0x1d7   : > { %v4222_v6 = vpop.f32.mrb[10].mxu1 }
 0x1d8   : > { %v1240_v16 = vpop.f32.mrb[11].mxu1 }
 0x1db   : > { %v4225_v55 = vpop.f32.mrb[12].mxu1 }
 0x1dc   : > { %v1250_v2 = vpop.f32.mrb[13].mxu1 }
 0x1df   : > { %v4228_v18 = vpop.f32.mrb[14].mxu1 }
 0x1e0   : > { %v6298_v5 = vpop.f32.mrb[15].mxu1 }
 0x1e4   : > { %v4607_v14 = vpop.f32.mrb[0].mxu0 }
 0x1e5   : > { %v4957_v20 = vadd.f32 %v4607_v14, %v4207_v42  ;;  %v2721_v41 = vpop.f32.mrb[1].mxu0 }
 0x1e6   : > { %v4958_v45 = vadd.f32 %v2721_v41, %v1190_v46 }
 0x1e7   : > { %v6311_v44 = vadd.f32 %v4957_v20, %v6303_v25 }
 0x1e8   : > { %v6314_v28 = vadd.f32 %v4958_v45, %v6303_v25  ;;  %v4610_v17 = vpop.f32.mrb[2].mxu0 }
 0x1e9   : > { %2952 = vst [vmem:[%s6308_s30 + $0x8] sm:$0xff] %v6311_v44  ;;  %v4959_v50 = vadd.f32 %v4610_v17, %v4210_v48  ;;  %v2731_v39 = vpop.f32.mrb[3].mxu0 }
 0x1ea   : > { %2951 = vst [vmem:[%s6308_s30] sm:$0xff] %v6314_v28  ;;  %v4960_v12 = vadd.f32 %v2731_v39, %v1200_v52 }
 0x1eb   : > { %v6321_v8 = vadd.f32 %v4959_v50, %v6303_v25 }
 0x1ec   : > { %v6324_v36 = vadd.f32 %v4960_v12, %v6303_v25  ;;  %v4613_v31 = vpop.f32.mrb[4].mxu0 }
 0x1ed   : > { %2954 = vst [vmem:[%s6308_s30 + $0x18] sm:$0xff] %v6321_v8  ;;  %v4961_v21 = vadd.f32 %v4613_v31, %v4213_v62  ;;  %v2741_v15 = vpop.f32.mrb[5].mxu0 }
 0x1ee   : > { %2953 = vst [vmem:[%s6308_s30 + $0x10] sm:$0xff] %v6324_v36  ;;  %v4962_v51 = vadd.f32 %v2741_v15, %v1210_v3 }
 0x1ef   : > { %v6331_v59 = vadd.f32 %v4961_v21, %v6303_v25 }
 0x1f0   : > { %v6334_v56 = vadd.f32 %v4962_v51, %v6303_v25  ;;  %v4616_v32 = vpop.f32.mrb[6].mxu0 }
 0x1f1   : > { %2956 = vst [vmem:[%s6308_s30 + $0x28] sm:$0xff] %v6331_v59  ;;  %v4963_v1 = vadd.f32 %v4616_v32, %v4216_v57  ;;  %v2751_v58 = vpop.f32.mrb[7].mxu0 }
 0x1f2   : > { %2955 = vst [vmem:[%s6308_s30 + $0x20] sm:$0xff] %v6334_v56  ;;  %v4964_v47 = vadd.f32 %v2751_v58, %v1220_v29 }
 0x1f3   : > { %v6341_v22 = vadd.f32 %v4963_v1, %v6303_v25 }
 0x1f4   : > { %v6344_v63 = vadd.f32 %v4964_v47, %v6303_v25  ;;  %v4619_v35 = vpop.f32.mrb[8].mxu0 }
 0x1f5   : > { %2958 = vst [vmem:[%s6308_s30 + $0x38] sm:$0xff] %v6341_v22  ;;  %v4965_v30 = vadd.f32 %v4619_v35, %v4219_v0  ;;  %v2761_v60 = vpop.f32.mrb[9].mxu0 }
 0x1f6   : > { %2957 = vst [vmem:[%s6308_s30 + $0x30] sm:$0xff] %v6344_v63  ;;  %v4966_v26 = vadd.f32 %v2761_v60, %v1230_v11 }
 0x1f7   : > { %v6351_v27 = vadd.f32 %v4965_v30, %v6303_v25 }
 0x1f8   : > { %v6354_v33 = vadd.f32 %v4966_v26, %v6303_v25  ;;  %v4622_v43 = vpop.f32.mrb[10].mxu0 }
 0x1f9   : > { %2960 = vst [vmem:[%s6308_s30 + $0x48] sm:$0xff] %v6351_v27  ;;  %v4967_v54 = vadd.f32 %v4622_v43, %v4222_v6  ;;  %v2771_v61 = vpop.f32.mrb[11].mxu0 }
 0x1fa   : > { %2959 = vst [vmem:[%s6308_s30 + $0x40] sm:$0xff] %v6354_v33  ;;  %v4968_v4 = vadd.f32 %v2771_v61, %v1240_v16 }
 0x1fb   : > { %v6361_v10 = vadd.f32 %v4967_v54, %v6303_v25 }
 0x1fc   : > { %v6364_v53 = vadd.f32 %v4968_v4, %v6303_v25  ;;  %v4625_v13 = vpop.f32.mrb[12].mxu0 }
 0x1fd   : > { %2962 = vst [vmem:[%s6308_s30 + $0x58] sm:$0xff] %v6361_v10  ;;  %v4969_v24 = vadd.f32 %v4625_v13, %v4225_v55  ;;  %v2781_v19 = vpop.f32.mrb[13].mxu0 }
 0x1fe   : > { %2961 = vst [vmem:[%s6308_s30 + $0x50] sm:$0xff] %v6364_v53  ;;  %v4970_v7 = vadd.f32 %v2781_v19, %v1250_v2 }
 0x1ff   : > { %v6371_v34 = vadd.f32 %v4969_v24, %v6303_v25 }
 0x200   : > { %v6374_v9 = vadd.f32 %v4970_v7, %v6303_v25  ;;  %v4628_v49 = vpop.f32.mrb[14].mxu0 }
 0x201   : > { %2964 = vst [vmem:[%s6308_s30 + $0x68] sm:$0xff] %v6371_v34  ;;  %v4971_v37 = vadd.f32 %v4628_v49, %v4228_v18  ;;  %v2791_v38 = vpop.f32.mrb[15].mxu0 }
 0x202   : > { %2963 = vst [vmem:[%s6308_s30 + $0x60] sm:$0xff] %v6374_v9  ;;  %v4972_v23 = vadd.f32 %v2791_v38, %v6298_v5 }
 0x203   : > { %v6382_v40 = vadd.f32 %v4971_v37, %v6303_v25  ;;  %v4311_v42 = vpop.f32.mrb[16].mxu1 }
 0x204   : > { %v6385_v46 = vadd.f32 %v4972_v23, %v6303_v25  ;;  %v4631_v48 = vpop.f32.mrb[16].mxu0  ;;  %v1576_v52 = vpop.f32.mrb[17].mxu1 }
 0x205   : > { %2966 = vst [vmem:[%s6308_s30 + $0x78] sm:$0xff] %v6382_v40  ;;  %v4973_v62 = vadd.f32 %v4631_v48, %v4311_v42  ;;  %v2801_v3 = vpop.f32.mrb[17].mxu0 }
 0x206   : > { %2965 = vst [vmem:[%s6308_s30 + $0x70] sm:$0xff] %v6385_v46  ;;  %v4974_v57 = vadd.f32 %v2801_v3, %v1576_v52 }
 0x207   : > { %v6392_v29 = vadd.f32 %v4973_v62, %v6303_v25  ;;  %v4314_v0 = vpop.f32.mrb[18].mxu1 }
 0x208   : > { %v6395_v11 = vadd.f32 %v4974_v57, %v6303_v25  ;;  %v4634_v6 = vpop.f32.mrb[18].mxu0  ;;  %v1586_v16 = vpop.f32.mrb[19].mxu1 }
 0x209   : > { %2968 = vst [vmem:[%s6308_s30 + $0x88] sm:$0xff] %v6392_v29  ;;  %v4975_v55 = vadd.f32 %v4634_v6, %v4314_v0  ;;  %v2811_v2 = vpop.f32.mrb[19].mxu0 }
 0x20a   : > { %2967 = vst [vmem:[%s6308_s30 + $0x80] sm:$0xff] %v6395_v11  ;;  %v4976_v18 = vadd.f32 %v2811_v2, %v1586_v16 }
 0x20b   : > { %v6402_v5 = vadd.f32 %v4975_v55, %v6303_v25  ;;  %v4317_v14 = vpop.f32.mrb[20].mxu1 }
 0x20c   : > { %v6405_v20 = vadd.f32 %v4976_v18, %v6303_v25  ;;  %v4637_v41 = vpop.f32.mrb[20].mxu0  ;;  %v1596_v45 = vpop.f32.mrb[21].mxu1 }
 0x20d   : > { %2970 = vst [vmem:[%s6308_s30 + $0x98] sm:$0xff] %v6402_v5  ;;  %v4977_v17 = vadd.f32 %v4637_v41, %v4317_v14  ;;  %v2821_v50 = vpop.f32.mrb[21].mxu0 }
 0x20e   : > { %2969 = vst [vmem:[%s6308_s30 + $0x90] sm:$0xff] %v6405_v20  ;;  %v4978_v39 = vadd.f32 %v2821_v50, %v1596_v45 }
 0x20f   : > { %v6412_v12 = vadd.f32 %v4977_v17, %v6303_v25  ;;  %v4320_v31 = vpop.f32.mrb[22].mxu1 }
 0x210   : > { %v6415_v21 = vadd.f32 %v4978_v39, %v6303_v25  ;;  %v4640_v15 = vpop.f32.mrb[22].mxu0  ;;  %v1606_v51 = vpop.f32.mrb[23].mxu1  ;;  %v5231_v39 = vmov (!%p3498_p5), 0.0  }
 0x211   : > { %2972 = vst [vmem:[%s6308_s30 + $0xa8] sm:$0xff] %v6412_v12  ;;  %v4979_v32 = vadd.f32 %v4640_v15, %v4320_v31  ;;  %v2831_v1 = vpop.f32.mrb[23].mxu0  ;;  %2987 = vst [vmem:[%s6593_s4] sm:$0x1] (!%p3498_p5), %v5231_v39 }
 0x212   : > { %2971 = vst [vmem:[%s6308_s30 + $0xa0] sm:$0xff] %v6415_v21  ;;  %v4980_v58 = vadd.f32 %v2831_v1, %v1606_v51  ;;  %2988 = vst [vmem:[%s6594_s5] sm:$0x1] (!%p3498_p5), %v5231_v39 }
 0x213   : > { %v6422_v47 = vadd.f32 %v4979_v32, %v6303_v25  ;;  %v4323_v35 = vpop.f32.mrb[24].mxu1 }
 0x214   : > { %v6425_v30 = vadd.f32 %v4980_v58, %v6303_v25  ;;  %v4643_v60 = vpop.f32.mrb[24].mxu0  ;;  %v1616_v26 = vpop.f32.mrb[25].mxu1 }
 0x215   : > { %2974 = vst [vmem:[%s6308_s30 + $0xb8] sm:$0xff] %v6422_v47  ;;  %v4981_v43 = vadd.f32 %v4643_v60, %v4323_v35  ;;  %v2841_v54 = vpop.f32.mrb[25].mxu0 }
 0x216   : > { %2973 = vst [vmem:[%s6308_s30 + $0xb0] sm:$0xff] %v6425_v30  ;;  %v4982_v61 = vadd.f32 %v2841_v54, %v1616_v26 }
 0x217   : > { %v6432_v4 = vadd.f32 %v4981_v43, %v6303_v25  ;;  %v4326_v13 = vpop.f32.mrb[26].mxu1 }
 0x218   : > { %v6435_v24 = vadd.f32 %v4982_v61, %v6303_v25  ;;  %v4646_v19 = vpop.f32.mrb[26].mxu0  ;;  %v1626_v7 = vpop.f32.mrb[27].mxu1 }
 0x219   : > { %2976 = vst [vmem:[%s6308_s30 + $0xc8] sm:$0xff] %v6432_v4  ;;  %v4983_v49 = vadd.f32 %v4646_v19, %v4326_v13  ;;  %v2851_v37 = vpop.f32.mrb[27].mxu0 }
 0x21a   : > { %2975 = vst [vmem:[%s6308_s30 + $0xc0] sm:$0xff] %v6435_v24  ;;  %v4984_v38 = vadd.f32 %v2851_v37, %v1626_v7 }
 0x21b   : > { %v6442_v23 = vadd.f32 %v4983_v49, %v6303_v25  ;;  %v4329_v42 = vpop.f32.mrb[28].mxu1 }
 0x21c   : > { %v6445_v48 = vadd.f32 %v4984_v38, %v6303_v25  ;;  %v4649_v52 = vpop.f32.mrb[28].mxu0  ;;  %v1636_v62 = vpop.f32.mrb[29].mxu1 }
 0x21d   : > { %2978 = vst [vmem:[%s6308_s30 + $0xd8] sm:$0xff] %v6442_v23  ;;  %v4985_v3 = vadd.f32 %v4649_v52, %v4329_v42  ;;  %v2861_v57 = vpop.f32.mrb[29].mxu0 }
 0x21e   : > { %2977 = vst [vmem:[%s6308_s30 + $0xd0] sm:$0xff] %v6445_v48  ;;  %v4986_v0 = vadd.f32 %v2861_v57, %v1636_v62 }
 0x21f   : > { %v6452_v6 = vadd.f32 %v4985_v3, %v6303_v25  ;;  %v4332_v16 = vpop.f32.mrb[30].mxu1 }
 0x220   : > { %v6455_v55 = vadd.f32 %v4986_v0, %v6303_v25  ;;  %v4652_v2 = vpop.f32.mrb[30].mxu0  ;;  %v1646_v18 = vpop.f32.mrb[31].mxu1  ;;  %2986 = sbr.rel (%p3498_p5) target bundleno = 551 (0x227), region = 36 }
 0x221   : > { %2980 = vst [vmem:[%s6308_s30 + $0xe8] sm:$0xff] %v6452_v6  ;;  %v4987_v14 = vadd.f32 %v4652_v2, %v4332_v16  ;;  %v2871_v41 = vpop.f32.mrb[31].mxu0 }
 0x222   : > { %2979 = vst [vmem:[%s6308_s30 + $0xe0] sm:$0xff] %v6455_v55  ;;  %v4988_v45 = vadd.f32 %v2871_v41, %v1646_v18 }
 0x223   : > { %v6462_v17 = vadd.f32 %v4987_v14, %v6303_v25 }
 0x224   : > { %v6465_v50 = vadd.f32 %v4988_v45, %v6303_v25 }
 0x225   : > { %2982 = vst [vmem:[%s6308_s30 + $0xf8] sm:$0xff] %v6462_v17 }
 0x226   : > { %2981 = vst [vmem:[%s6308_s30 + $0xf0] sm:$0xff] %v6465_v50 }
 0x227 PF: > { %v2990_v25 = vadd.f32 %v6311_v44, %v6314_v28  ;;  %v3030_v51 = vmul.f32 %v6314_v28, %v6314_v28  ;;  %v3031_v32 = vmul.f32 %v6311_v44, %v6311_v44  ;;  %v3032_v58 = vmul.f32 %v6324_v36, %v6324_v36 }
 0x228   : > { %v3033_v60 = vmul.f32 %v6321_v8, %v6321_v8  ;;  %v3034_v54 = vmul.f32 %v6334_v56, %v6334_v56  ;;  %v3035_v44 = vmul.f32 %v6331_v59, %v6331_v59  ;;  %v3036_v19 = vmul.f32 %v6344_v63, %v6344_v63 }
 0x229   : > { %v2991_v31 = vadd.f32 %v2990_v25, %v6324_v36  ;;  %v3062_v26 = vadd.f32 %v3031_v32, %v3030_v51  ;;  %v3037_v49 = vmul.f32 %v6341_v22, %v6341_v22  ;;  %v3038_v38 = vmul.f32 %v6354_v33, %v6354_v33 }
 0x22a   : > { %v3039_v52 = vmul.f32 %v6351_v27, %v6351_v27  ;;  %v3040_v3 = vmul.f32 %v6364_v53, %v6364_v53  ;;  %v3041_v0 = vmul.f32 %v6361_v10, %v6361_v10  ;;  %v3042_v2 = vmul.f32 %v6374_v9, %v6374_v9 }
 0x22b   : > { %v2992_v15 = vadd.f32 %v2991_v31, %v6321_v8  ;;  %v3063_v28 = vadd.f32 %v3062_v26, %v3032_v58  ;;  %v3043_v14 = vmul.f32 %v6371_v34, %v6371_v34  ;;  %v3044_v45 = vmul.f32 %v6385_v46, %v6385_v46 }
 0x22c   : > { %v3045_v25 = vmul.f32 %v6382_v40, %v6382_v40  ;;  %v3047_v32 = vmul.f32 %v6392_v29, %v6392_v29  ;;  %v3048_v58 = vmul.f32 %v6405_v20, %v6405_v20 }
 0x22d   : > { %v2993_v1 = vadd.f32 %v2992_v15, %v6334_v56  ;;  %v3064_v13 = vadd.f32 %v3063_v28, %v3033_v60  ;;  %v3046_v15 = vmul.f32 %v6395_v11, %v6395_v11  ;;  %v3049_v60 = vmul.f32 %v6402_v5, %v6402_v5 }
 0x22e   : > { %v3051_v28 = vmul.f32 %v6412_v12, %v6412_v12 }
 0x22f   : > { %v2994_v35 = vadd.f32 %v2993_v1, %v6331_v59  ;;  %v3065_v7 = vadd.f32 %v3064_v13, %v3034_v54 }
 0x231   : > { %v2995_v43 = vadd.f32 %v2994_v35, %v6344_v63  ;;  %v3066_v37 = vadd.f32 %v3065_v7, %v3035_v44  ;;  %v3052_v44 = vmul.f32 %v6425_v30, %v6425_v30  ;;  %v3054_v7 = vmul.f32 %v6435_v24, %v6435_v24 }
 0x233   : > { %v2996_v61 = vadd.f32 %v2995_v43, %v6341_v22  ;;  %v3067_v42 = vadd.f32 %v3066_v37, %v3036_v19  ;;  %v3050_v43 = vmul.f32 %v6415_v21, %v6415_v21 }
 0x235   : > { %v2997_v36 = vadd.f32 %v2996_v61, %v6354_v33  ;;  %v3068_v62 = vadd.f32 %v3067_v42, %v3037_v49  ;;  %v3055_v49 = vmul.f32 %v6432_v4, %v6432_v4  ;;  %v3057_v42 = vmul.f32 %v6442_v23, %v6442_v23 }
 0x237   : > { %v2998_v8 = vadd.f32 %v2997_v36, %v6351_v27  ;;  %v3069_v57 = vadd.f32 %v3068_v62, %v3038_v38  ;;  %v3053_v36 = vmul.f32 %v6422_v47, %v6422_v47 }
 0x239   : > { %v2999_v56 = vadd.f32 %v2998_v8, %v6364_v53  ;;  %v3070_v16 = vadd.f32 %v3069_v57, %v3039_v52  ;;  %v3058_v52 = vmul.f32 %v6455_v55, %v6455_v55  ;;  %v3060_v57 = vmul.f32 %v6465_v50, %v6465_v50 }
 0x23b   : > { %v3000_v59 = vadd.f32 %v2999_v56, %v6361_v10  ;;  %v3071_v18 = vadd.f32 %v3070_v16, %v3040_v3  ;;  %v3056_v56 = vmul.f32 %v6445_v48, %v6445_v48 }
 0x23d   : > { %v3001_v63 = vadd.f32 %v3000_v59, %v6374_v9  ;;  %v3072_v41 = vadd.f32 %v3071_v18, %v3041_v0 }
 0x23f   : > { %v3002_v22 = vadd.f32 %v3001_v63, %v6371_v34  ;;  %v3073_v39 = vadd.f32 %v3072_v41, %v3042_v2  ;;  %v3059_v63 = vmul.f32 %v6452_v6, %v6452_v6 }
 0x241   : > { %v3003_v33 = vadd.f32 %v3002_v22, %v6385_v46  ;;  %v3074_v31 = vadd.f32 %v3073_v39, %v3043_v14 }
 0x243   : > { %v3004_v27 = vadd.f32 %v3003_v33, %v6382_v40  ;;  %v3075_v51 = vadd.f32 %v3074_v31, %v3044_v45 }
 0x245   : > { %v3005_v53 = vadd.f32 %v3004_v27, %v6395_v11  ;;  %v3076_v1 = vadd.f32 %v3075_v51, %v3045_v25 }
 0x247   : > { %v3006_v10 = vadd.f32 %v3005_v53, %v6392_v29  ;;  %v3077_v35 = vadd.f32 %v3076_v1, %v3046_v15 }
 0x249   : > { %v3007_v9 = vadd.f32 %v3006_v10, %v6405_v20  ;;  %v3078_v26 = vadd.f32 %v3077_v35, %v3047_v32  ;;  %v3029_v10 = vld [vmem:[%s6594_s5] sm:$0x1] }
 0x24b   : > { %v3008_v34 = vadd.f32 %v3007_v9, %v6402_v5  ;;  %v3079_v54 = vadd.f32 %v3078_v26, %v3048_v58 }
 0x24d   : > { %v3009_v46 = vadd.f32 %v3008_v34, %v6415_v21  ;;  %v3080_v61 = vadd.f32 %v3079_v54, %v3049_v60 }
 0x24f   : > { %v3010_v40 = vadd.f32 %v3009_v46, %v6412_v12  ;;  %v3081_v13 = vadd.f32 %v3080_v61, %v3050_v43 }
 0x251   : > { %v3011_v11 = vadd.f32 %v3010_v40, %v6425_v30  ;;  %v3082_v19 = vadd.f32 %v3081_v13, %v3051_v28 }
 0x253   : > { %v3012_v29 = vadd.f32 %v3011_v11, %v6422_v47  ;;  %v3083_v8 = vadd.f32 %v3082_v19, %v3052_v44 }
 0x255   : > { %v3013_v20 = vadd.f32 %v3012_v29, %v6435_v24  ;;  %v3084_v37 = vadd.f32 %v3083_v8, %v3053_v36 }
 0x257   : > { %v3014_v5 = vadd.f32 %v3013_v20, %v6432_v4  ;;  %v3085_v38 = vadd.f32 %v3084_v37, %v3054_v7 }
 0x259   : > { %v3015_v21 = vadd.f32 %v3014_v5, %v6445_v48  ;;  %v3086_v59 = vadd.f32 %v3085_v38, %v3055_v49 }
 0x25b   : > { %v3016_v12 = vadd.f32 %v3015_v21, %v6442_v23  ;;  %v3087_v62 = vadd.f32 %v3086_v59, %v3056_v56  ;;  %v3061_v23 = vmul.f32 %v6462_v17, %v6462_v17 }
 0x25d   : > { %v3017_v30 = vadd.f32 %v3016_v12, %v6455_v55  ;;  %v3088_v3 = vadd.f32 %v3087_v62, %v3057_v42 }
 0x25f   : > { %v3018_v47 = vadd.f32 %v3017_v30, %v6452_v6  ;;  %v3089_v22 = vadd.f32 %v3088_v3, %v3058_v52  ;;  %v2989_v6 = vld [vmem:[%s6593_s4] sm:$0x1] }
 0x261   : > { %v3019_v24 = vadd.f32 %v3018_v47, %v6465_v50  ;;  %v3090_v16 = vadd.f32 %v3089_v22, %v3059_v63 }
 0x263   : > { %v3020_v4 = vadd.f32 %v3019_v24, %v6462_v17  ;;  %v3091_v2 = vadd.f32 %v3090_v16, %v3060_v57 }
 0x265   : > { %v3021_v48 = vrot.slane %v3020_v4, 4  ;;  %v3092_v18 = vadd.f32 %v3091_v2, %v3061_v23 }
 0x267   : > { %v3022_v0 = vadd.f32 %v3021_v48, %v3020_v4  ;;  %v3093_v14 = vrot.slane %v3092_v18, 4 }
 0x269   : > { %v3023_v33 = vrot.slane %v3022_v0, 2  ;;  %v3094_v53 = vadd.f32 %v3093_v14, %v3092_v18 }
 0x26b   : > { %v3024_v55 = vadd.f32 %v3023_v33, %v3022_v0  ;;  %v3095_v50 = vrot.slane %v3094_v53, 2 }
 0x26d   : > { %v3025_v27 = vrot.slane %v3024_v55, 1  ;;  %v3096_v17 = vadd.f32 %v3095_v50, %v3094_v53 }
 0x26f   : > { %v3026_v41 = vadd.f32 %v3025_v27, %v3024_v55  ;;  %v3097_v39 = vrot.slane %v3096_v17, 1 }
 0x271   : > { %v3027_v45 = vadd.f32 %v3026_v41, %v2989_v6  ;;  %v3098_v25 = vadd.f32 %v3097_v39, %v3096_v17 }
 0x273   : > { %3028 = vst [vmem:[%s6593_s4] sm:$0x1] %v3027_v45  ;;  %v3099_v31 = vadd.f32 %v3098_v25, %v3029_v10 }
 0x275   : > { %3100 = vst [vmem:[%s6594_s5] sm:$0x1] %v3099_v31 }
 0x276 PF: > { %s16_s18 = sadd.s32 1, %s5229_s18  }
 0x277   : > { %p13_p6 = scmp.ge.s32.totalorder %s16_s18, 4  }
 0x279   :  { %15 = sbr.rel (!%p13_p6) target bundleno = 1 (0x1), region = 92 }

</bundles_post_ra>
